<compile_context>
chip_gen: v7x
topology: tpu7x:2x2x1
jax: 0.10.0
libtpu: 0.0.40
codegen_flags: <defaults>
</compile_context>

<pallas_src>
import functools

import jax
import jax.numpy as jnp
from jax import lax
from jax.experimental import pallas as pl
from jax.experimental.pallas import tpu as pltpu


def _round_up(n, m):
    return ((n + m - 1) // m) * m


def bilstm_kernel(x_ref, wih_ref, whh_ref, b_ref, wlin_ref, blin_ref, out_ref, *, T):
    """Fused BiLSTM forward.

    x_ref:    (T*B, D)      bf16  time-major rows (row = t*B + b)
    wih_ref:  (D, 8*Hp)     bf16  gate cols interleaved [i_f,i_b, f_f,f_b, g_f,g_b, o_f,o_b]
    whh_ref:  (2*Hp, 8*Hp)  bf16  block-diagonal (rows 0:Hp -> h_fwd, Hp:2Hp -> h_bwd)
    b_ref:    (1, 8*Hp)     f32   fused b_ih + b_hh, same interleave
    wlin_ref: (2*Hp, Cp)    bf16  rows 0:Hp fwd hidden, Hp:2Hp bwd hidden
    blin_ref: (1, Cp)       f32
    out_ref:  (T*B, Cp)     f32
    """
    TB = x_ref.shape[0]
    B = TB // T
    H8 = wih_ref.shape[-1]
    Hp = H8 // 8
    H2 = 2 * Hp

    # ---- 1) Input projection for both directions + fused bias: one batched matmul
    #         (bf16 in, f32 accumulate). Result stays in registers / compiler VMEM.
    gx = jnp.dot(x_ref[...], wih_ref[...],
                 preferred_element_type=jnp.float32) + b_ref[...]        # (T*B, 8Hp) f32

    # Hoisted fwd/bwd combine (off the serial chain): within each 2Hp gate block the
    # first Hp lanes are the forward direction (consumes x[s]), the last Hp lanes the
    # backward direction (consumes x[T-1-s]).
    col = lax.broadcasted_iota(jnp.int32, (B, H8), 1)
    fwd_lane = (col % H2) < Hp
    gx_steps = [
        jnp.where(fwd_lane, gx[s * B:(s + 1) * B], gx[(T - 1 - s) * B:(T - s) * B])
        for s in range(T)
    ]

    w_hh = whh_ref[...]      # loop-invariant (2Hp, 8Hp) bf16
    # TODO(synk): pin W_hh in MXU weight registers (pltpu.matmul_push_rhs/acc_lhs/pop)
    #             if the bundle dump shows a per-step weight push on the serial chain.

    h = jnp.zeros((B, H2), jnp.float32)      # [h_fwd | h_bwd]
    c = jnp.zeros((B, H2), jnp.float32)      # [c_fwd | c_bwd]

    # ---- 2) Fused fwd/bwd recurrence, fully unrolled (T is small & static).
    # TODO(synk): for long sequences switch to lax.fori_loop(..., unroll=k) with VMEM
    #             carried hidden buffers to bound register live ranges / code size.
    h_steps = []
    for s in range(T):
        gates = gx_steps[s] + jnp.dot(h.astype(w_hh.dtype), w_hh,
                                      preferred_element_type=jnp.float32)  # (B, 8Hp) f32
        i = jax.nn.sigmoid(gates[:, 0 * H2:1 * H2])      # 128-lane aligned slices
        f = jax.nn.sigmoid(gates[:, 1 * H2:2 * H2])
        g = jnp.tanh(gates[:, 2 * H2:3 * H2])
        o = jax.nn.sigmoid(gates[:, 3 * H2:4 * H2])
        c = f * c + i * g
        h = o * jnp.tanh(c)
        h_steps.append(h)                                # keep full (B, 2Hp) in registers

    # ---- 3) Head: tanh + fused linear on stacked hidden states, one lane-dense store.
    hf = jnp.concatenate(h_steps, axis=0)[:, 0:Hp]            # fwd hidden, time-major
    hb = jnp.concatenate(h_steps[::-1], axis=0)[:, Hp:H2]     # bwd hidden, time-major
    yf = jnp.tanh(hf).astype(wlin_ref.dtype)
    yb = jnp.tanh(hb).astype(wlin_ref.dtype)
    logits = (jnp.dot(yf, wlin_ref[0:Hp, :], preferred_element_type=jnp.float32)
              + jnp.dot(yb, wlin_ref[Hp:H2, :], preferred_element_type=jnp.float32)
              + blin_ref[...])
    out_ref[...] = logits.astype(out_ref.dtype)


def _pad_gate_cols(w, H, Hp):
    """(R, 4H) -> (R, 4Hp): zero-pad each of the 4 gate blocks' columns from H to Hp."""
    R = w.shape[0]
    return jnp.pad(w.reshape(R, 4, H), ((0, 0), (0, 0), (0, Hp - H))).reshape(R, 4 * Hp)


def _interleave_gate_cols(wf, wb, Hp):
    """(R,4Hp),(R,4Hp) -> (R,8Hp), columns [i_f,i_b, f_f,f_b, g_f,g_b, o_f,o_b]."""
    R = wf.shape[0]
    return jnp.concatenate([wf.reshape(R, 4, Hp), wb.reshape(R, 4, Hp)],
                           axis=2).reshape(R, 8 * Hp)


def bilstm_forward(words, params, *, H, C):
    # Embedding gather (glue): padding row already zeroed in params["embed"].
    # TODO(synk): move the gather in-kernel via PrefetchScalarGridSpec once T*B*D is large.
    x = params["embed"][words]                    # (T, B, D) f32
    T, B, D = x.shape

    # Padded sizes: 128-lane gate blocks, full 8-sublane batch tile, lane-dense classes.
    Hp = _round_up(max(H, 64), 64)                # 2*Hp is a multiple of 128
    Bp = _round_up(max(B, 8), 8)
    Cp = _round_up(max(C, 128), 128)

    # --- pack / pad weights (done once, outside the kernel) ---
    wih_f = _pad_gate_cols(params["wih_f"], H, Hp)
    wih_b = _pad_gate_cols(params["wih_b"], H, Hp)
    b_f = _pad_gate_cols(params["b_f"], H, Hp)
    b_b = _pad_gate_cols(params["b_b"], H, Hp)
    whh_f = jnp.pad(_pad_gate_cols(params["whh_f"], H, Hp), ((0, Hp - H), (0, 0)))
    whh_b = jnp.pad(_pad_gate_cols(params["whh_b"], H, Hp), ((0, Hp - H), (0, 0)))

    wih = _interleave_gate_cols(wih_f, wih_b, Hp)                  # (D, 8Hp)
    b = _interleave_gate_cols(b_f, b_b, Hp)                        # (1, 8Hp) f32
    zh = jnp.zeros_like(whh_f)
    whh = jnp.concatenate([_interleave_gate_cols(whh_f, zh, Hp),   # rows 0:Hp  (h_fwd)
                           _interleave_gate_cols(zh, whh_b, Hp)],  # rows Hp:2Hp (h_bwd)
                          axis=0)                                  # (2Hp, 8Hp)

    wlin = params["wlin"]                                          # (2H, C)
    wlin_p = jnp.concatenate(
        [jnp.pad(wlin[0:H], ((0, Hp - H), (0, Cp - C))),           # fwd hidden rows
         jnp.pad(wlin[H:2 * H], ((0, Hp - H), (0, Cp - C)))],      # bwd hidden rows
        axis=0)                                                    # (2Hp, Cp)
    blin_p = jnp.pad(params["blin"], ((0, 0), (0, Cp - C)))        # (1, Cp) f32

    # --- pad batch, flatten time-major; bf16 matmul inputs, f32 biases ---
    x_p = jnp.pad(x, ((0, 0), (0, Bp - B), (0, 0))).reshape(T * Bp, D)

    x_p = x_p.astype(jnp.bfloat16)
    wih = wih.astype(jnp.bfloat16)
    whh = whh.astype(jnp.bfloat16)
    wlin_p = wlin_p.astype(jnp.bfloat16)

    vmem = pl.BlockSpec(memory_space=pltpu.MemorySpace.VMEM)
    out = pl.pallas_call(
        functools.partial(bilstm_kernel, T=T),
        out_shape=jax.ShapeDtypeStruct((T * Bp, Cp), jnp.float32),
        in_specs=[vmem] * 6,
        out_specs=vmem,
    )(x_p, wih, whh, b, wlin_p, blin_p)

    return out.reshape(T, Bp, Cp)[:, :B, :C]


# ---------------- pure-JAX reference for validation ----------------
def _lstm_dir_ref(x, w_ih, w_hh, b, H, reverse=False):
    T, B, _ = x.shape

    def step(carry, x_t):
        h, c = carry
        gates = x_t @ w_ih + h @ w_hh + b
        i = jax.nn.sigmoid(gates[:, :H])
        f = jax.nn.sigmoid(gates[:, H:2 * H])
        g = jnp.tanh(gates[:, 2 * H:3 * H])
        o = jax.nn.sigmoid(gates[:, 3 * H:])
        c = f * c + i * g
        h = o * jnp.tanh(c)
        return (h, c), h

    xs = x[::-1] if reverse else x
    _, hs = lax.scan(step, (jnp.zeros((B, H)), jnp.zeros((B, H))), xs)
    return hs[::-1] if reverse else hs


def bilstm_ref(words, params, *, H):
    x = params["embed"][words]
    hf = _lstm_dir_ref(x, params["wih_f"], params["whh_f"], params["b_f"], H)
    hb = _lstm_dir_ref(x, params["wih_b"], params["whh_b"], params["b_b"], H,
                       reverse=True)
    y = jnp.tanh(jnp.concatenate([hf, hb], axis=-1))
    return y @ params["wlin"] + params["blin"]


if __name__ == "__main__":
    # Small, deterministic config:
    V, D, H, C = 20, 16, 32, 5         # embed_num, embed_dim==rnn_input_size, rnn_hidden_size, class_num
    T, B = 8, 2                        # seq_len, batch
    padding_id = 0

    key = jax.random.PRNGKey(0)
    ks = jax.random.split(key, 12)

    def rnd(k, shape, scale=0.1):
        return scale * jax.random.normal(k, shape, dtype=jnp.float32)

    embed = rnd(ks[0], (V, D))
    embed = embed.at[padding_id].set(0.0)            # padding_idx row zeroed

    params = {
        "embed": embed,
        # forward direction (gate order i, f, g, o; b_ih + b_hh fused)
        "wih_f": rnd(ks[1], (D, 4 * H)),
        "whh_f": rnd(ks[2], (H, 4 * H)),
        "b_f":   rnd(ks[3], (1, 4 * H)),
        # backward direction
        "wih_b": rnd(ks[4], (D, 4 * H)),
        "whh_b": rnd(ks[5], (H, 4 * H)),
        "b_b":   rnd(ks[6], (1, 4 * H)),
        # linear head
        "wlin":  rnd(ks[7], (2 * H, C)),
        "blin":  rnd(ks[8], (1, C)),
    }

    words = jax.random.randint(ks[9], (T, B), 0, V, dtype=jnp.int32)

    out = bilstm_forward(words, params, H=H, C=C)
    out = jax.block_until_ready(out)

    ref = jax.block_until_ready(bilstm_ref(words, params, H=H))
    assert out.shape == (T, B, C)
    assert jnp.allclose(out, ref, atol=2e-2, rtol=2e-2), "mismatch vs reference"

    print("KERNEL_OK")
</pallas_src>

<mosaic_0001>
module attributes {stable_mosaic.version = 11 : i64} {
  func.func @bilstm_kernel(%arg0: memref<64x16xbf16, #tpu.memory_space<vmem>>, %arg1: memref<16x512xbf16, #tpu.memory_space<vmem>>, %arg2: memref<128x512xbf16, #tpu.memory_space<vmem>>, %arg3: memref<1x512xf32, #tpu.memory_space<vmem>>, %arg4: memref<128x128xbf16, #tpu.memory_space<vmem>>, %arg5: memref<1x128xf32, #tpu.memory_space<vmem>>, %arg6: memref<64x128xf32, #tpu.memory_space<vmem>>) attributes {dimension_semantics = [], scalar_prefetch = 0 : i64, scratch_operands = 0 : i64, tpu.core_type = #tpu.core_type<tc>} {
    %c0 = arith.constant 0 : index
    %c0_0 = arith.constant 0 : index
    %0 = vector.load %arg0[%c0, %c0_0] : memref<64x16xbf16, #tpu.memory_space<vmem>>, vector<64x16xbf16>
    %c0_1 = arith.constant 0 : index
    %c0_2 = arith.constant 0 : index
    %1 = vector.load %arg1[%c0_1, %c0_2] : memref<16x512xbf16, #tpu.memory_space<vmem>>, vector<16x512xbf16>
    %cst = arith.constant dense<0.000000e+00> : vector<64x512xf32>
    %2 = tpu.matmul %0, %1, %cst {dimension_numbers = #tpu.dot_dimension_numbers<[1], [0], [0], [1], [0, 0, 1, 1], [], []>} : vector<64x16xbf16>, vector<16x512xbf16>, vector<64x512xf32> -> vector<64x512xf32>
    %c0_3 = arith.constant 0 : index
    %c0_4 = arith.constant 0 : index
    %3 = vector.load %arg3[%c0_3, %c0_4] : memref<1x512xf32, #tpu.memory_space<vmem>>, vector<1x512xf32>
    %4 = vector.broadcast %3 : vector<1x512xf32> to vector<64x512xf32>
    %5 = arith.addf %2, %4 : vector<64x512xf32>
    %6 = tpu.iota {dimensions = array<i32: 1>} : vector<8x512xi32>
    %c128_i32 = arith.constant 128 : i32
    %c0_i32 = arith.constant 0 : i32
    %7 = arith.cmpi eq, %c128_i32, %c0_i32 : i32
    %c1_i32 = arith.constant 1 : i32
    %8 = arith.select %7, %c1_i32, %c128_i32 : i32
    %9 = vector.broadcast %8 : i32 to vector<8x512xi32>
    %10 = arith.remsi %6, %9 : vector<8x512xi32>
    %c0_i32_5 = arith.constant 0 : i32
    %11 = vector.broadcast %c0_i32_5 : i32 to vector<8x512xi32>
    %12 = arith.cmpi ne, %10, %11 : vector<8x512xi32>
    %c0_i32_6 = arith.constant 0 : i32
    %13 = vector.broadcast %c0_i32_6 : i32 to vector<8x512xi32>
    %14 = arith.cmpi slt, %10, %13 : vector<8x512xi32>
    %c0_i32_7 = arith.constant 0 : i32
    %15 = arith.cmpi slt, %8, %c0_i32_7 : i32
    %16 = vector.broadcast %15 : i1 to vector<8x512xi1>
    %17 = vector.broadcast %16 : vector<8x512xi1> to vector<8x512xi1>
    %18 = arith.xori %14, %17 : vector<8x512xi1>
    %19 = arith.andi %18, %12 : vector<8x512xi1>
    %20 = vector.broadcast %8 : i32 to vector<8x512xi32>
    %21 = arith.addi %10, %20 : vector<8x512xi32>
    %22 = arith.select %19, %21, %10 : vector<8x512xi1>, vector<8x512xi32>
    %c64_i32 = arith.constant 64 : i32
    %23 = vector.broadcast %c64_i32 : i32 to vector<8x512xi32>
    %24 = arith.cmpi slt, %22, %23 : vector<8x512xi32>
    %25 = vector.extract_strided_slice %5 {offsets = [0, 0], sizes = [8, 512], strides = [1, 1]} : vector<64x512xf32> to vector<8x512xf32>
    %26 = vector.extract_strided_slice %5 {offsets = [56, 0], sizes = [8, 512], strides = [1, 1]} : vector<64x512xf32> to vector<8x512xf32>
    %27 = arith.select %24, %25, %26 : vector<8x512xi1>, vector<8x512xf32>
    %28 = vector.extract_strided_slice %5 {offsets = [8, 0], sizes = [8, 512], strides = [1, 1]} : vector<64x512xf32> to vector<8x512xf32>
    %29 = vector.extract_strided_slice %5 {offsets = [48, 0], sizes = [8, 512], strides = [1, 1]} : vector<64x512xf32> to vector<8x512xf32>
    %30 = arith.select %24, %28, %29 : vector<8x512xi1>, vector<8x512xf32>
    %31 = vector.extract_strided_slice %5 {offsets = [16, 0], sizes = [8, 512], strides = [1, 1]} : vector<64x512xf32> to vector<8x512xf32>
    %32 = vector.extract_strided_slice %5 {offsets = [40, 0], sizes = [8, 512], strides = [1, 1]} : vector<64x512xf32> to vector<8x512xf32>
    %33 = arith.select %24, %31, %32 : vector<8x512xi1>, vector<8x512xf32>
    %34 = vector.extract_strided_slice %5 {offsets = [24, 0], sizes = [8, 512], strides = [1, 1]} : vector<64x512xf32> to vector<8x512xf32>
    %35 = vector.extract_strided_slice %5 {offsets = [32, 0], sizes = [8, 512], strides = [1, 1]} : vector<64x512xf32> to vector<8x512xf32>
    %36 = arith.select %24, %34, %35 : vector<8x512xi1>, vector<8x512xf32>
    %37 = vector.extract_strided_slice %5 {offsets = [32, 0], sizes = [8, 512], strides = [1, 1]} : vector<64x512xf32> to vector<8x512xf32>
    %38 = vector.extract_strided_slice %5 {offsets = [24, 0], sizes = [8, 512], strides = [1, 1]} : vector<64x512xf32> to vector<8x512xf32>
    %39 = arith.select %24, %37, %38 : vector<8x512xi1>, vector<8x512xf32>
    %40 = vector.extract_strided_slice %5 {offsets = [40, 0], sizes = [8, 512], strides = [1, 1]} : vector<64x512xf32> to vector<8x512xf32>
    %41 = vector.extract_strided_slice %5 {offsets = [16, 0], sizes = [8, 512], strides = [1, 1]} : vector<64x512xf32> to vector<8x512xf32>
    %42 = arith.select %24, %40, %41 : vector<8x512xi1>, vector<8x512xf32>
    %43 = vector.extract_strided_slice %5 {offsets = [48, 0], sizes = [8, 512], strides = [1, 1]} : vector<64x512xf32> to vector<8x512xf32>
    %44 = vector.extract_strided_slice %5 {offsets = [8, 0], sizes = [8, 512], strides = [1, 1]} : vector<64x512xf32> to vector<8x512xf32>
    %45 = arith.select %24, %43, %44 : vector<8x512xi1>, vector<8x512xf32>
    %46 = vector.extract_strided_slice %5 {offsets = [56, 0], sizes = [8, 512], strides = [1, 1]} : vector<64x512xf32> to vector<8x512xf32>
    %47 = vector.extract_strided_slice %5 {offsets = [0, 0], sizes = [8, 512], strides = [1, 1]} : vector<64x512xf32> to vector<8x512xf32>
    %48 = arith.select %24, %46, %47 : vector<8x512xi1>, vector<8x512xf32>
    %c0_8 = arith.constant 0 : index
    %c0_9 = arith.constant 0 : index
    %49 = vector.load %arg2[%c0_8, %c0_9] : memref<128x512xbf16, #tpu.memory_space<vmem>>, vector<128x512xbf16>
    %cst_10 = arith.constant 0.000000e+00 : f32
    %50 = vector.broadcast %cst_10 : f32 to vector<8x128xf32>
    %cst_11 = arith.constant 0.000000e+00 : f32
    %51 = vector.broadcast %cst_11 : f32 to vector<8x128xf32>
    %52 = arith.truncf %50 : vector<8x128xf32> to vector<8x128xbf16>
    %cst_12 = arith.constant dense<0.000000e+00> : vector<8x512xf32>
    %53 = tpu.matmul %52, %49, %cst_12 {dimension_numbers = #tpu.dot_dimension_numbers<[1], [0], [0], [1], [0, 0, 1, 1], [], []>} : vector<8x128xbf16>, vector<128x512xbf16>, vector<8x512xf32> -> vector<8x512xf32>
    %54 = arith.addf %27, %53 : vector<8x512xf32>
    %55 = vector.extract_strided_slice %54 {offsets = [0, 0], sizes = [8, 128], strides = [1, 1]} : vector<8x512xf32> to vector<8x128xf32>
    %56 = arith.negf %55 : vector<8x128xf32>
    %57 = math.exp %56 : vector<8x128xf32>
    %cst_13 = arith.constant 1.000000e+00 : f32
    %58 = vector.broadcast %cst_13 : f32 to vector<8x128xf32>
    %59 = arith.addf %58, %57 : vector<8x128xf32>
    %60 = arith.divf %58, %59 : vector<8x128xf32>
    %61 = vector.extract_strided_slice %54 {offsets = [0, 128], sizes = [8, 128], strides = [1, 1]} : vector<8x512xf32> to vector<8x128xf32>
    %62 = arith.negf %61 : vector<8x128xf32>
    %63 = math.exp %62 : vector<8x128xf32>
    %cst_14 = arith.constant 1.000000e+00 : f32
    %64 = vector.broadcast %cst_14 : f32 to vector<8x128xf32>
    %65 = arith.addf %64, %63 : vector<8x128xf32>
    %66 = arith.divf %64, %65 : vector<8x128xf32>
    %67 = vector.extract_strided_slice %54 {offsets = [0, 256], sizes = [8, 128], strides = [1, 1]} : vector<8x512xf32> to vector<8x128xf32>
    %68 = math.tanh %67 : vector<8x128xf32>
    %69 = vector.extract_strided_slice %54 {offsets = [0, 384], sizes = [8, 128], strides = [1, 1]} : vector<8x512xf32> to vector<8x128xf32>
    %70 = arith.negf %69 : vector<8x128xf32>
    %71 = math.exp %70 : vector<8x128xf32>
    %cst_15 = arith.constant 1.000000e+00 : f32
    %72 = vector.broadcast %cst_15 : f32 to vector<8x128xf32>
    %73 = arith.addf %72, %71 : vector<8x128xf32>
    %74 = arith.divf %72, %73 : vector<8x128xf32>
    %75 = arith.mulf %66, %51 : vector<8x128xf32>
    %76 = arith.mulf %60, %68 : vector<8x128xf32>
    %77 = arith.addf %75, %76 : vector<8x128xf32>
    %78 = math.tanh %77 : vector<8x128xf32>
    %79 = arith.mulf %74, %78 : vector<8x128xf32>
    %80 = arith.truncf %79 : vector<8x128xf32> to vector<8x128xbf16>
    %cst_16 = arith.constant dense<0.000000e+00> : vector<8x512xf32>
    %81 = tpu.matmul %80, %49, %cst_16 {dimension_numbers = #tpu.dot_dimension_numbers<[1], [0], [0], [1], [0, 0, 1, 1], [], []>} : vector<8x128xbf16>, vector<128x512xbf16>, vector<8x512xf32> -> vector<8x512xf32>
    %82 = arith.addf %30, %81 : vector<8x512xf32>
    %83 = vector.extract_strided_slice %82 {offsets = [0, 0], sizes = [8, 128], strides = [1, 1]} : vector<8x512xf32> to vector<8x128xf32>
    %84 = arith.negf %83 : vector<8x128xf32>
    %85 = math.exp %84 : vector<8x128xf32>
    %cst_17 = arith.constant 1.000000e+00 : f32
    %86 = vector.broadcast %cst_17 : f32 to vector<8x128xf32>
    %87 = arith.addf %86, %85 : vector<8x128xf32>
    %88 = arith.divf %86, %87 : vector<8x128xf32>
    %89 = vector.extract_strided_slice %82 {offsets = [0, 128], sizes = [8, 128], strides = [1, 1]} : vector<8x512xf32> to vector<8x128xf32>
    %90 = arith.negf %89 : vector<8x128xf32>
    %91 = math.exp %90 : vector<8x128xf32>
    %cst_18 = arith.constant 1.000000e+00 : f32
    %92 = vector.broadcast %cst_18 : f32 to vector<8x128xf32>
    %93 = arith.addf %92, %91 : vector<8x128xf32>
    %94 = arith.divf %92, %93 : vector<8x128xf32>
    %95 = vector.extract_strided_slice %82 {offsets = [0, 256], sizes = [8, 128], strides = [1, 1]} : vector<8x512xf32> to vector<8x128xf32>
    %96 = math.tanh %95 : vector<8x128xf32>
    %97 = vector.extract_strided_slice %82 {offsets = [0, 384], sizes = [8, 128], strides = [1, 1]} : vector<8x512xf32> to vector<8x128xf32>
    %98 = arith.negf %97 : vector<8x128xf32>
    %99 = math.exp %98 : vector<8x128xf32>
    %cst_19 = arith.constant 1.000000e+00 : f32
    %100 = vector.broadcast %cst_19 : f32 to vector<8x128xf32>
    %101 = arith.addf %100, %99 : vector<8x128xf32>
    %102 = arith.divf %100, %101 : vector<8x128xf32>
    %103 = arith.mulf %94, %77 : vector<8x128xf32>
    %104 = arith.mulf %88, %96 : vector<8x128xf32>
    %105 = arith.addf %103, %104 : vector<8x128xf32>
    %106 = math.tanh %105 : vector<8x128xf32>
    %107 = arith.mulf %102, %106 : vector<8x128xf32>
    %108 = arith.truncf %107 : vector<8x128xf32> to vector<8x128xbf16>
    %cst_20 = arith.constant dense<0.000000e+00> : vector<8x512xf32>
    %109 = tpu.matmul %108, %49, %cst_20 {dimension_numbers = #tpu.dot_dimension_numbers<[1], [0], [0], [1], [0, 0, 1, 1], [], []>} : vector<8x128xbf16>, vector<128x512xbf16>, vector<8x512xf32> -> vector<8x512xf32>
    %110 = arith.addf %33, %109 : vector<8x512xf32>
    %111 = vector.extract_strided_slice %110 {offsets = [0, 0], sizes = [8, 128], strides = [1, 1]} : vector<8x512xf32> to vector<8x128xf32>
    %112 = arith.negf %111 : vector<8x128xf32>
    %113 = math.exp %112 : vector<8x128xf32>
    %cst_21 = arith.constant 1.000000e+00 : f32
    %114 = vector.broadcast %cst_21 : f32 to vector<8x128xf32>
    %115 = arith.addf %114, %113 : vector<8x128xf32>
    %116 = arith.divf %114, %115 : vector<8x128xf32>
    %117 = vector.extract_strided_slice %110 {offsets = [0, 128], sizes = [8, 128], strides = [1, 1]} : vector<8x512xf32> to vector<8x128xf32>
    %118 = arith.negf %117 : vector<8x128xf32>
    %119 = math.exp %118 : vector<8x128xf32>
    %cst_22 = arith.constant 1.000000e+00 : f32
    %120 = vector.broadcast %cst_22 : f32 to vector<8x128xf32>
    %121 = arith.addf %120, %119 : vector<8x128xf32>
    %122 = arith.divf %120, %121 : vector<8x128xf32>
    %123 = vector.extract_strided_slice %110 {offsets = [0, 256], sizes = [8, 128], strides = [1, 1]} : vector<8x512xf32> to vector<8x128xf32>
    %124 = math.tanh %123 : vector<8x128xf32>
    %125 = vector.extract_strided_slice %110 {offsets = [0, 384], sizes = [8, 128], strides = [1, 1]} : vector<8x512xf32> to vector<8x128xf32>
    %126 = arith.negf %125 : vector<8x128xf32>
    %127 = math.exp %126 : vector<8x128xf32>
    %cst_23 = arith.constant 1.000000e+00 : f32
    %128 = vector.broadcast %cst_23 : f32 to vector<8x128xf32>
    %129 = arith.addf %128, %127 : vector<8x128xf32>
    %130 = arith.divf %128, %129 : vector<8x128xf32>
    %131 = arith.mulf %122, %105 : vector<8x128xf32>
    %132 = arith.mulf %116, %124 : vector<8x128xf32>
    %133 = arith.addf %131, %132 : vector<8x128xf32>
    %134 = math.tanh %133 : vector<8x128xf32>
    %135 = arith.mulf %130, %134 : vector<8x128xf32>
    %136 = arith.truncf %135 : vector<8x128xf32> to vector<8x128xbf16>
    %cst_24 = arith.constant dense<0.000000e+00> : vector<8x512xf32>
    %137 = tpu.matmul %136, %49, %cst_24 {dimension_numbers = #tpu.dot_dimension_numbers<[1], [0], [0], [1], [0, 0, 1, 1], [], []>} : vector<8x128xbf16>, vector<128x512xbf16>, vector<8x512xf32> -> vector<8x512xf32>
    %138 = arith.addf %36, %137 : vector<8x512xf32>
    %139 = vector.extract_strided_slice %138 {offsets = [0, 0], sizes = [8, 128], strides = [1, 1]} : vector<8x512xf32> to vector<8x128xf32>
    %140 = arith.negf %139 : vector<8x128xf32>
    %141 = math.exp %140 : vector<8x128xf32>
    %cst_25 = arith.constant 1.000000e+00 : f32
    %142 = vector.broadcast %cst_25 : f32 to vector<8x128xf32>
    %143 = arith.addf %142, %141 : vector<8x128xf32>
    %144 = arith.divf %142, %143 : vector<8x128xf32>
    %145 = vector.extract_strided_slice %138 {offsets = [0, 128], sizes = [8, 128], strides = [1, 1]} : vector<8x512xf32> to vector<8x128xf32>
    %146 = arith.negf %145 : vector<8x128xf32>
    %147 = math.exp %146 : vector<8x128xf32>
    %cst_26 = arith.constant 1.000000e+00 : f32
    %148 = vector.broadcast %cst_26 : f32 to vector<8x128xf32>
    %149 = arith.addf %148, %147 : vector<8x128xf32>
    %150 = arith.divf %148, %149 : vector<8x128xf32>
    %151 = vector.extract_strided_slice %138 {offsets = [0, 256], sizes = [8, 128], strides = [1, 1]} : vector<8x512xf32> to vector<8x128xf32>
    %152 = math.tanh %151 : vector<8x128xf32>
    %153 = vector.extract_strided_slice %138 {offsets = [0, 384], sizes = [8, 128], strides = [1, 1]} : vector<8x512xf32> to vector<8x128xf32>
    %154 = arith.negf %153 : vector<8x128xf32>
    %155 = math.exp %154 : vector<8x128xf32>
    %cst_27 = arith.constant 1.000000e+00 : f32
    %156 = vector.broadcast %cst_27 : f32 to vector<8x128xf32>
    %157 = arith.addf %156, %155 : vector<8x128xf32>
    %158 = arith.divf %156, %157 : vector<8x128xf32>
    %159 = arith.mulf %150, %133 : vector<8x128xf32>
    %160 = arith.mulf %144, %152 : vector<8x128xf32>
    %161 = arith.addf %159, %160 : vector<8x128xf32>
    %162 = math.tanh %161 : vector<8x128xf32>
    %163 = arith.mulf %158, %162 : vector<8x128xf32>
    %164 = arith.truncf %163 : vector<8x128xf32> to vector<8x128xbf16>
    %cst_28 = arith.constant dense<0.000000e+00> : vector<8x512xf32>
    %165 = tpu.matmul %164, %49, %cst_28 {dimension_numbers = #tpu.dot_dimension_numbers<[1], [0], [0], [1], [0, 0, 1, 1], [], []>} : vector<8x128xbf16>, vector<128x512xbf16>, vector<8x512xf32> -> vector<8x512xf32>
    %166 = arith.addf %39, %165 : vector<8x512xf32>
    %167 = vector.extract_strided_slice %166 {offsets = [0, 0], sizes = [8, 128], strides = [1, 1]} : vector<8x512xf32> to vector<8x128xf32>
    %168 = arith.negf %167 : vector<8x128xf32>
    %169 = math.exp %168 : vector<8x128xf32>
    %cst_29 = arith.constant 1.000000e+00 : f32
    %170 = vector.broadcast %cst_29 : f32 to vector<8x128xf32>
    %171 = arith.addf %170, %169 : vector<8x128xf32>
    %172 = arith.divf %170, %171 : vector<8x128xf32>
    %173 = vector.extract_strided_slice %166 {offsets = [0, 128], sizes = [8, 128], strides = [1, 1]} : vector<8x512xf32> to vector<8x128xf32>
    %174 = arith.negf %173 : vector<8x128xf32>
    %175 = math.exp %174 : vector<8x128xf32>
    %cst_30 = arith.constant 1.000000e+00 : f32
    %176 = vector.broadcast %cst_30 : f32 to vector<8x128xf32>
    %177 = arith.addf %176, %175 : vector<8x128xf32>
    %178 = arith.divf %176, %177 : vector<8x128xf32>
    %179 = vector.extract_strided_slice %166 {offsets = [0, 256], sizes = [8, 128], strides = [1, 1]} : vector<8x512xf32> to vector<8x128xf32>
    %180 = math.tanh %179 : vector<8x128xf32>
    %181 = vector.extract_strided_slice %166 {offsets = [0, 384], sizes = [8, 128], strides = [1, 1]} : vector<8x512xf32> to vector<8x128xf32>
    %182 = arith.negf %181 : vector<8x128xf32>
    %183 = math.exp %182 : vector<8x128xf32>
    %cst_31 = arith.constant 1.000000e+00 : f32
    %184 = vector.broadcast %cst_31 : f32 to vector<8x128xf32>
    %185 = arith.addf %184, %183 : vector<8x128xf32>
    %186 = arith.divf %184, %185 : vector<8x128xf32>
    %187 = arith.mulf %178, %161 : vector<8x128xf32>
    %188 = arith.mulf %172, %180 : vector<8x128xf32>
    %189 = arith.addf %187, %188 : vector<8x128xf32>
    %190 = math.tanh %189 : vector<8x128xf32>
    %191 = arith.mulf %186, %190 : vector<8x128xf32>
    %192 = arith.truncf %191 : vector<8x128xf32> to vector<8x128xbf16>
    %cst_32 = arith.constant dense<0.000000e+00> : vector<8x512xf32>
    %193 = tpu.matmul %192, %49, %cst_32 {dimension_numbers = #tpu.dot_dimension_numbers<[1], [0], [0], [1], [0, 0, 1, 1], [], []>} : vector<8x128xbf16>, vector<128x512xbf16>, vector<8x512xf32> -> vector<8x512xf32>
    %194 = arith.addf %42, %193 : vector<8x512xf32>
    %195 = vector.extract_strided_slice %194 {offsets = [0, 0], sizes = [8, 128], strides = [1, 1]} : vector<8x512xf32> to vector<8x128xf32>
    %196 = arith.negf %195 : vector<8x128xf32>
    %197 = math.exp %196 : vector<8x128xf32>
    %cst_33 = arith.constant 1.000000e+00 : f32
    %198 = vector.broadcast %cst_33 : f32 to vector<8x128xf32>
    %199 = arith.addf %198, %197 : vector<8x128xf32>
    %200 = arith.divf %198, %199 : vector<8x128xf32>
    %201 = vector.extract_strided_slice %194 {offsets = [0, 128], sizes = [8, 128], strides = [1, 1]} : vector<8x512xf32> to vector<8x128xf32>
    %202 = arith.negf %201 : vector<8x128xf32>
    %203 = math.exp %202 : vector<8x128xf32>
    %cst_34 = arith.constant 1.000000e+00 : f32
    %204 = vector.broadcast %cst_34 : f32 to vector<8x128xf32>
    %205 = arith.addf %204, %203 : vector<8x128xf32>
    %206 = arith.divf %204, %205 : vector<8x128xf32>
    %207 = vector.extract_strided_slice %194 {offsets = [0, 256], sizes = [8, 128], strides = [1, 1]} : vector<8x512xf32> to vector<8x128xf32>
    %208 = math.tanh %207 : vector<8x128xf32>
    %209 = vector.extract_strided_slice %194 {offsets = [0, 384], sizes = [8, 128], strides = [1, 1]} : vector<8x512xf32> to vector<8x128xf32>
    %210 = arith.negf %209 : vector<8x128xf32>
    %211 = math.exp %210 : vector<8x128xf32>
    %cst_35 = arith.constant 1.000000e+00 : f32
    %212 = vector.broadcast %cst_35 : f32 to vector<8x128xf32>
    %213 = arith.addf %212, %211 : vector<8x128xf32>
    %214 = arith.divf %212, %213 : vector<8x128xf32>
    %215 = arith.mulf %206, %189 : vector<8x128xf32>
    %216 = arith.mulf %200, %208 : vector<8x128xf32>
    %217 = arith.addf %215, %216 : vector<8x128xf32>
    %218 = math.tanh %217 : vector<8x128xf32>
    %219 = arith.mulf %214, %218 : vector<8x128xf32>
    %220 = arith.truncf %219 : vector<8x128xf32> to vector<8x128xbf16>
    %cst_36 = arith.constant dense<0.000000e+00> : vector<8x512xf32>
    %221 = tpu.matmul %220, %49, %cst_36 {dimension_numbers = #tpu.dot_dimension_numbers<[1], [0], [0], [1], [0, 0, 1, 1], [], []>} : vector<8x128xbf16>, vector<128x512xbf16>, vector<8x512xf32> -> vector<8x512xf32>
    %222 = arith.addf %45, %221 : vector<8x512xf32>
    %223 = vector.extract_strided_slice %222 {offsets = [0, 0], sizes = [8, 128], strides = [1, 1]} : vector<8x512xf32> to vector<8x128xf32>
    %224 = arith.negf %223 : vector<8x128xf32>
    %225 = math.exp %224 : vector<8x128xf32>
    %cst_37 = arith.constant 1.000000e+00 : f32
    %226 = vector.broadcast %cst_37 : f32 to vector<8x128xf32>
    %227 = arith.addf %226, %225 : vector<8x128xf32>
    %228 = arith.divf %226, %227 : vector<8x128xf32>
    %229 = vector.extract_strided_slice %222 {offsets = [0, 128], sizes = [8, 128], strides = [1, 1]} : vector<8x512xf32> to vector<8x128xf32>
    %230 = arith.negf %229 : vector<8x128xf32>
    %231 = math.exp %230 : vector<8x128xf32>
    %cst_38 = arith.constant 1.000000e+00 : f32
    %232 = vector.broadcast %cst_38 : f32 to vector<8x128xf32>
    %233 = arith.addf %232, %231 : vector<8x128xf32>
    %234 = arith.divf %232, %233 : vector<8x128xf32>
    %235 = vector.extract_strided_slice %222 {offsets = [0, 256], sizes = [8, 128], strides = [1, 1]} : vector<8x512xf32> to vector<8x128xf32>
    %236 = math.tanh %235 : vector<8x128xf32>
    %237 = vector.extract_strided_slice %222 {offsets = [0, 384], sizes = [8, 128], strides = [1, 1]} : vector<8x512xf32> to vector<8x128xf32>
    %238 = arith.negf %237 : vector<8x128xf32>
    %239 = math.exp %238 : vector<8x128xf32>
    %cst_39 = arith.constant 1.000000e+00 : f32
    %240 = vector.broadcast %cst_39 : f32 to vector<8x128xf32>
    %241 = arith.addf %240, %239 : vector<8x128xf32>
    %242 = arith.divf %240, %241 : vector<8x128xf32>
    %243 = arith.mulf %234, %217 : vector<8x128xf32>
    %244 = arith.mulf %228, %236 : vector<8x128xf32>
    %245 = arith.addf %243, %244 : vector<8x128xf32>
    %246 = math.tanh %245 : vector<8x128xf32>
    %247 = arith.mulf %242, %246 : vector<8x128xf32>
    %248 = arith.truncf %247 : vector<8x128xf32> to vector<8x128xbf16>
    %cst_40 = arith.constant dense<0.000000e+00> : vector<8x512xf32>
    %249 = tpu.matmul %248, %49, %cst_40 {dimension_numbers = #tpu.dot_dimension_numbers<[1], [0], [0], [1], [0, 0, 1, 1], [], []>} : vector<8x128xbf16>, vector<128x512xbf16>, vector<8x512xf32> -> vector<8x512xf32>
    %250 = arith.addf %48, %249 : vector<8x512xf32>
    %251 = vector.extract_strided_slice %250 {offsets = [0, 0], sizes = [8, 128], strides = [1, 1]} : vector<8x512xf32> to vector<8x128xf32>
    %252 = arith.negf %251 : vector<8x128xf32>
    %253 = math.exp %252 : vector<8x128xf32>
    %cst_41 = arith.constant 1.000000e+00 : f32
    %254 = vector.broadcast %cst_41 : f32 to vector<8x128xf32>
    %255 = arith.addf %254, %253 : vector<8x128xf32>
    %256 = arith.divf %254, %255 : vector<8x128xf32>
    %257 = vector.extract_strided_slice %250 {offsets = [0, 128], sizes = [8, 128], strides = [1, 1]} : vector<8x512xf32> to vector<8x128xf32>
    %258 = arith.negf %257 : vector<8x128xf32>
    %259 = math.exp %258 : vector<8x128xf32>
    %cst_42 = arith.constant 1.000000e+00 : f32
    %260 = vector.broadcast %cst_42 : f32 to vector<8x128xf32>
    %261 = arith.addf %260, %259 : vector<8x128xf32>
    %262 = arith.divf %260, %261 : vector<8x128xf32>
    %263 = vector.extract_strided_slice %250 {offsets = [0, 256], sizes = [8, 128], strides = [1, 1]} : vector<8x512xf32> to vector<8x128xf32>
    %264 = math.tanh %263 : vector<8x128xf32>
    %265 = vector.extract_strided_slice %250 {offsets = [0, 384], sizes = [8, 128], strides = [1, 1]} : vector<8x512xf32> to vector<8x128xf32>
    %266 = arith.negf %265 : vector<8x128xf32>
    %267 = math.exp %266 : vector<8x128xf32>
    %cst_43 = arith.constant 1.000000e+00 : f32
    %268 = vector.broadcast %cst_43 : f32 to vector<8x128xf32>
    %269 = arith.addf %268, %267 : vector<8x128xf32>
    %270 = arith.divf %268, %269 : vector<8x128xf32>
    %271 = arith.mulf %262, %245 : vector<8x128xf32>
    %272 = arith.mulf %256, %264 : vector<8x128xf32>
    %273 = arith.addf %271, %272 : vector<8x128xf32>
    %274 = math.tanh %273 : vector<8x128xf32>
    %275 = arith.mulf %270, %274 : vector<8x128xf32>
    %276 = tpu.concatenate %79, %107, %135, %163, %191, %219, %247, %275 in 0 : vector<8x128xf32>, vector<8x128xf32>, vector<8x128xf32>, vector<8x128xf32>, vector<8x128xf32>, vector<8x128xf32>, vector<8x128xf32>, vector<8x128xf32> -> vector<64x128xf32>
    %277 = vector.extract_strided_slice %276 {offsets = [0, 0], sizes = [64, 64], strides = [1, 1]} : vector<64x128xf32> to vector<64x64xf32>
    %278 = tpu.concatenate %275, %247, %219, %191, %163, %135, %107, %79 in 0 : vector<8x128xf32>, vector<8x128xf32>, vector<8x128xf32>, vector<8x128xf32>, vector<8x128xf32>, vector<8x128xf32>, vector<8x128xf32>, vector<8x128xf32> -> vector<64x128xf32>
    %279 = vector.extract_strided_slice %278 {offsets = [0, 64], sizes = [64, 64], strides = [1, 1]} : vector<64x128xf32> to vector<64x64xf32>
    %280 = math.tanh %277 : vector<64x64xf32>
    %281 = arith.truncf %280 : vector<64x64xf32> to vector<64x64xbf16>
    %282 = math.tanh %279 : vector<64x64xf32>
    %283 = arith.truncf %282 : vector<64x64xf32> to vector<64x64xbf16>
    %c0_44 = arith.constant 0 : index
    %c0_45 = arith.constant 0 : index
    %284 = vector.load %arg4[%c0_44, %c0_45] : memref<128x128xbf16, #tpu.memory_space<vmem>>, vector<64x128xbf16>
    %cst_46 = arith.constant dense<0.000000e+00> : vector<64x128xf32>
    %285 = tpu.matmul %281, %284, %cst_46 {dimension_numbers = #tpu.dot_dimension_numbers<[1], [0], [0], [1], [0, 0, 1, 1], [], []>} : vector<64x64xbf16>, vector<64x128xbf16>, vector<64x128xf32> -> vector<64x128xf32>
    %c64 = arith.constant 64 : index
    %c0_47 = arith.constant 0 : index
    %286 = vector.load %arg4[%c64, %c0_47] : memref<128x128xbf16, #tpu.memory_space<vmem>>, vector<64x128xbf16>
    %cst_48 = arith.constant dense<0.000000e+00> : vector<64x128xf32>
    %287 = tpu.matmul %283, %286, %cst_48 {dimension_numbers = #tpu.dot_dimension_numbers<[1], [0], [0], [1], [0, 0, 1, 1], [], []>} : vector<64x64xbf16>, vector<64x128xbf16>, vector<64x128xf32> -> vector<64x128xf32>
    %288 = arith.addf %285, %287 : vector<64x128xf32>
    %c0_49 = arith.constant 0 : index
    %c0_50 = arith.constant 0 : index
    %289 = vector.load %arg5[%c0_49, %c0_50] : memref<1x128xf32, #tpu.memory_space<vmem>>, vector<1x128xf32>
    %290 = vector.broadcast %289 : vector<1x128xf32> to vector<64x128xf32>
    %291 = arith.addf %288, %290 : vector<64x128xf32>
    %c0_51 = arith.constant 0 : index
    %c0_52 = arith.constant 0 : index
    %292 = vector.load %arg6[%c0_51, %c0_52] : memref<64x128xf32, #tpu.memory_space<vmem>>, vector<64x128xf32>
    tpu.vector_store %arg6[%c0_51, %c0_52], %291 {strides = array<i32>} : memref<64x128xf32, #tpu.memory_space<vmem>>, vector<64x128xf32>,
    return
  }
}

</mosaic_0001>

<bundles_post_ra>
// kernel: tpu_custom_call.1
= control target key start
LH: loop header
LB: loop body
LE: loop exit
PB: predicated region body
PF: predicated region fallthrough
CT: control target
= control target key end

     0   :  { %11 = vsyncpa [#allocation3], 0  ;;  %s3201_s0 = inlined_call_operand.vmem [shape: bf16[64,16], index: 0, kind: input, shape index: {}]   ;;  %s3202_s1 = inlined_call_operand.vmem [shape: bf16[16,512], index: 1, kind: input, shape index: {}]   ;;  %s3203_s2 = inlined_call_operand.hbm [shape: bf16[128,512], index: 2, kind: input, shape index: {}]   ;;  %s3204_s3 = inlined_call_operand.vmem [shape: f32[1,512], index: 3, kind: input, shape index: {}]   ;;  %s3205_s4 = inlined_call_operand.hbm [shape: bf16[128,128], index: 4, kind: input, shape index: {}]   ;;  %s3206_s5 = inlined_call_operand.vmem [shape: f32[1,128], index: 5, kind: input, shape index: {}]   ;;  %s3207_s6 = inlined_call_operand.hbm [shape: f32[64,128], index: 6, kind: output, shape index: {}]  }
   0x1   :  { %12 = vsyncpa [#allocation6], 0 }
   0x2   :  { %13 = vsyncpa [#allocation4], 0  ;;  %s2211_s21 = smov [#allocation2]   ;;  %s2139_s25 = scalar_lea.hbm %s3203_s2, 4096 }
   0x3   :  { %s23_s22 = sshll.u32 %s2211_s21, 4  ;;  %p2140_p0 = scmp.ne.s32.totalorder %s3203_s2, %s2139_s25  ;;  %s24_s22 = int_to_ptr.vmem [resolvable:$true] %s23_s22 }
   0x4   :  { %p2143_p1 = scmp.lt.u32.totalorder %s2139_s25, %s3203_s2 }
   0x6   :  { %p2145_p2 = pnand %p2143_p1, %p2140_p0 }
   0x8   :  { %2148 = shalt.err (!%p2145_p2)
}
   0x9   :  { %s2149_s30 = scalar_lea.vmem %s24_s22, 4096  ;;  %p2154_p4 = scmp.lt.s32.totalorder %s24_s22, %s24_s22 }
   0xa   :  { %p2150_p3 = scmp.ne.s32.totalorder %s24_s22, %s2149_s30  ;;  %p2155_p5 = scmp.lt.s32.totalorder %s2149_s30, %s2149_s30 }
   0xc   :  { %p2156_p6 = por %p2155_p5, %p2154_p4 }
   0xe   :  { %p2157_p7 = pnand %p2156_p6, %p2150_p3 }
  0x10   :  { %2160 = shalt.err (!%p2157_p7)
}
  0x11   :  { %s2212_s7 = smov 256   ;;  %s2213_s8 = smov 16  }
  0x12   :  { %29 = dma.hbm_to_vmem [thread:$0]  %s3203_s2, 4096, %s24_s22, [#allocation3], %s2212_s7, %s2212_s7, %s2213_s8  }
  0x13   :  { %s2214_s11 = smov [#allocation5]   ;;  %s2161_s15 = scalar_lea.hbm %s3205_s4, 1024 }
  0x14   :  { %s37_s12 = sshll.u32 %s2214_s11, 4  ;;  %p2162_p8 = scmp.ne.s32.totalorder %s3205_s4, %s2161_s15  ;;  %s38_s12 = int_to_ptr.vmem [resolvable:$true] %s37_s12 }
  0x15   :  { %p2165_p9 = scmp.lt.u32.totalorder %s2161_s15, %s3205_s4 }
  0x17   :  { %p2167_p10 = pnand %p2165_p9, %p2162_p8 }
  0x19   :  { %2170 = shalt.err (!%p2167_p10)
}
  0x1a   :  { %s2171_s20 = scalar_lea.vmem %s38_s12, 1024  ;;  %p2176_p12 = scmp.lt.s32.totalorder %s38_s12, %s38_s12 }
  0x1b   :  { %p2172_p11 = scmp.ne.s32.totalorder %s38_s12, %s2171_s20  ;;  %p2177_p13 = scmp.lt.s32.totalorder %s2171_s20, %s2171_s20 }
  0x1d   :  { %p2178_p0 = por %p2177_p13, %p2176_p12 }
  0x1f   :  { %p2179_p1 = pnand %p2178_p0, %p2172_p11 }
  0x21   :  { %2182 = shalt.err (!%p2179_p1)
}
  0x22   :  { %s2215_s2 = smov 64   ;;  %s2216_s21 = smov 4  }
  0x23   :  { %43 = dma.hbm_to_vmem [thread:$0]  %s3205_s4, 1024, %s38_s12, [#allocation6], %s2215_s2, %s2215_s2, %s2216_s21  }
  0x24   :  { %2205 = dma.done.wait [#allocation3], 4096  }
  0x25   :  { %2206 = vsyncadd [#allocation3], 4294963200 }
  0x26   :  { %2207 = dma.done.wait [#allocation6], 1024  }
  0x27   :  { %2208 = vsyncadd [#allocation6], 4294966272  ;;  %v3208_v0 = vmov 0   ;;  %v1897_v1 = vld [vmem:[%s3202_s1 + $0x4] ss:$16 sps:$4 sm:$0xff]   ;;  %vm127_vm0 = vcmask 130048   ;;  %v67_v41 = vlaneseq }
  0x28   :  { %172 = vmatprep.mubr.bf16.mxu0 %v3208_v0  ;;  %245 = vmatprep.mubr.bf16.mxu1 %v3208_v0  ;;  %v1899_v2 = vld [vmem:[%s3202_s1 + $0xc] ss:$16 sps:$4 sm:$0xff]   ;;  %v1901_v3 = vld [vmem:[%s3202_s1] ss:$16 sps:$4 sm:$0xff]   ;;  %v1902_v4 = vld [vmem:[%s3202_s1 + $0x8] ss:$16 sps:$4 sm:$0xff]  }
  0x29   :  { %140 = vmatprep.subr.bf16.mxu0 %v1897_v1  ;;  %213 = vmatprep.subr.bf16.mxu1 %v1899_v2  ;;  %v1903_v5 = vld [vmem:[%s3201_s0] sm:$0xff]   ;;  %v2301_v7 = vld [vmem:[#allocation2 + $0xc] ss:$16 sps:$4 sm:$0xff]   ;;  %v2306_v9 = vld [vmem:[#allocation2 + $0x8] ss:$16 sps:$4 sm:$0xff]   ;;  %v68_v42 = vshrl.u32 %v67_v41, 7 }
  0x2a   :  { %141 = vmatpush1.bf16.msra.mxu0 %v1901_v3  ;;  %214 = vmatpush1.bf16.msra.mxu1 %v1902_v4  ;;  %v2299_v6 = vld [vmem:[#allocation2 + $0x4] ss:$16 sps:$4 sm:$0xff]   ;;  %3251 = vst [vmem:[#allocation12_spill] sm:$0xff] %v2301_v7  ;;  %v2303_v8 = vld [vmem:[#allocation2] ss:$16 sps:$4 sm:$0xff]   ;;  %v1916_v14 = vld [vmem:[%s3201_s0 + $0x8] sm:$0xff]  }
  0x2b   :  { %3250 = vst [vmem:[#allocation11_spill] sm:$0xff] %v2299_v6  ;;  %567 = vmatprep.subr.bf16.mxu0 %v2299_v6  ;;  %v2310_v10 = vld [vmem:[#allocation2 + $0x24] ss:$16 sps:$4 sm:$0xff]   ;;  %608 = vmatprep.subr.bf16.mxu1 %v2301_v7  ;;  %v2314_v11 = vld [vmem:[#allocation2 + $0x2c] ss:$16 sps:$4 sm:$0xff]   ;;  %v77_v43 = vsub.s32 2, %v68_v42 }
  0x2c   :  { %v2316_v12 = vld [vmem:[#allocation2 + $0x20] ss:$16 sps:$4 sm:$0xff]   ;;  %v2318_v13 = vld [vmem:[#allocation2 + $0x28] ss:$16 sps:$4 sm:$0xff]   ;;  %v2327_v15 = vld [vmem:[#allocation2 + $0x44] ss:$16 sps:$4 sm:$0xff]  }
  0x2d   :  { %1750 = vmatmul.mubr.msk.bf16.vlgmr.msra.gmra.mrb[0].mxu0 %vm127_vm0, %v1903_v5  ;;  %1754 = vmatmul.mubr.msk.bf16.vlgmr.msra.gmra.mrb[0].mxu1 %vm127_vm0, %v1903_v5  ;;  %v2330_v16 = vld [vmem:[#allocation2 + $0x4c] ss:$16 sps:$4 sm:$0xff]   ;;  %v2333_v17 = vld [vmem:[#allocation2 + $0x40] ss:$16 sps:$4 sm:$0xff]   ;;  %v2335_v18 = vld [vmem:[#allocation2 + $0x48] ss:$16 sps:$4 sm:$0xff]  }
  0x2e   :  { %568 = vmatpush1.bf16.msra.mxu0 %v2303_v8  ;;  %609 = vmatpush1.bf16.msra.mxu1 %v2306_v9  ;;  %v2339_v19 = vld [vmem:[#allocation2 + $0x64] ss:$16 sps:$4 sm:$0xff]   ;;  %v2342_v20 = vld [vmem:[#allocation2 + $0x6c] ss:$16 sps:$4 sm:$0xff]   ;;  %v2346_v21 = vld [vmem:[#allocation2 + $0x60] ss:$16 sps:$4 sm:$0xff]  }
  0x2f   :  { %569 = vmatprep.subr.bf16.mxu0 %v2310_v10  ;;  %610 = vmatprep.subr.bf16.mxu1 %v2314_v11  ;;  %v2349_v22 = vld [vmem:[#allocation2 + $0x68] ss:$16 sps:$4 sm:$0xff]   ;;  %v2354_v23 = vld [vmem:[#allocation2 + $0x84] ss:$16 sps:$4 sm:$0xff]   ;;  %v2358_v24 = vld [vmem:[#allocation2 + $0x8c] ss:$16 sps:$4 sm:$0xff]  }
  0x30   :  { %182 = vmatprep.mubr.bf16.mxu0 %v3208_v0  ;;  %255 = vmatprep.mubr.bf16.mxu1 %v3208_v0  ;;  %v1929_v25 = vld [vmem:[%s3201_s0 + $0x10] sm:$0xff]   ;;  %v2368_v27 = vld [vmem:[#allocation2 + $0x88] ss:$16 sps:$4 sm:$0xff]   ;;  %v2373_v29 = vld [vmem:[#allocation2 + $0xac] ss:$16 sps:$4 sm:$0xff]   ;;  %v81_v44 = vsub.s32 3, %v68_v42 }
  0x31   :  { %v2364_v26 = vld [vmem:[#allocation2 + $0x80] ss:$16 sps:$4 sm:$0xff]   ;;  %v2370_v28 = vld [vmem:[#allocation2 + $0xa4] ss:$16 sps:$4 sm:$0xff]   ;;  %v2380_v31 = vld [vmem:[#allocation2 + $0xa8] ss:$16 sps:$4 sm:$0xff]  }
  0x32   :  { %570 = vmatpush1.bf16.msra.mxu0 %v2316_v12  ;;  %611 = vmatpush1.bf16.msra.mxu1 %v2318_v13  ;;  %v2378_v30 = vld [vmem:[#allocation2 + $0xa0] ss:$16 sps:$4 sm:$0xff]   ;;  %v1942_v32 = vld [vmem:[%s3201_s0 + $0x18] sm:$0xff]   ;;  %v2388_v33 = vld [vmem:[#allocation2 + $0xc4] ss:$16 sps:$4 sm:$0xff]   ;;  %v69_v45 = vsub.s32 0, %v68_v42 }
  0x33   :  { %571 = vmatprep.subr.bf16.mxu0 %v2327_v15  ;;  %612 = vmatprep.subr.bf16.mxu1 %v2330_v16  ;;  %v2392_v34 = vld [vmem:[#allocation2 + $0xcc] ss:$16 sps:$4 sm:$0xff]   ;;  %v2394_v35 = vld [vmem:[#allocation2 + $0xc0] ss:$16 sps:$4 sm:$0xff]   ;;  %v2396_v36 = vld [vmem:[#allocation2 + $0xc8] ss:$16 sps:$4 sm:$0xff]  }
  0x34   :  { %v2398_v37 = vld [vmem:[#allocation2 + $0xe4] ss:$16 sps:$4 sm:$0xff]   ;;  %v2401_v38 = vld [vmem:[#allocation2 + $0xec] ss:$16 sps:$4 sm:$0xff]   ;;  %v2406_v39 = vld [vmem:[#allocation2 + $0xe0] ss:$16 sps:$4 sm:$0xff]  }
  0x35   :  { %1751 = vmatmul.mubr.msk.bf16.gmra.mrb[4].mxu0 %vm127_vm0, %v1916_v14  ;;  %1755 = vmatmul.mubr.msk.bf16.gmra.mrb[4].mxu1 %vm127_vm0, %v1916_v14  ;;  %3252 = vst [vmem:[#allocation13_spill] sm:$0xff] %v2398_v37  ;;  %3253 = vst [vmem:[#allocation14_spill] sm:$0xff] %v2401_v38  ;;  %v2414_v40 = vld [vmem:[#allocation2 + $0xe8] ss:$16 sps:$4 sm:$0xff]   ;;  %v65_v46 = vld [vmem:[%s3204_s3] sm:$0xf] }
  0x36   :  { %572 = vmatpush1.bf16.msra.mxu0 %v2333_v17  ;;  %192 = vmatprep.mubr.bf16.mxu0 %v3208_v0  ;;  %3254 = vst [vmem:[#allocation15_spill] sm:$0xff] %v2406_v39  ;;  %3255 = vst [vmem:[#allocation16_spill] sm:$0xff] %v2414_v40  ;;  %v73_v47 = vsub.s32 1, %v68_v42  ;;  %v2461_v48 = vrot.slane %v65_v46, %v77_v43  ;;  %v2467_v51 = vrot.slane %v65_v46, %v81_v44  ;;  %vm1522_vm5 = vcmask 523264  }
  0x37   :  { %613 = vmatpush1.bf16.msra.mxu1 %v2335_v18  ;;  %573 = vmatprep.subr.bf16.mxu0 %v2339_v19  ;;  %v2469_v52 = vrot.slane %v65_v46, %v69_v45  ;;  %v2489_v1 = vand.u32 127, %v67_v41 }
  0x38   :  { %614 = vmatprep.subr.bf16.mxu1 %v2342_v20  ;;  %265 = vmatprep.mubr.bf16.mxu1 %v3208_v0  ;;  %v2475_v55 = vrot.slane %v65_v46, %v73_v47 }
  0x39   :  { %v289_v4 = vadd.s32 256, %v2489_v1  ;;  %v288_v42 = vadd.s32 128, %v2489_v1  ;;  %v290_v43 = vadd.s32 384, %v2489_v1  ;;  %vm339_vm1 = vcmp.lt.s32.totalorder %v2489_v1, 64 }
  0x3a   :  { %574 = vmatpush1.bf16.msra.mxu0 %v2346_v21 }
  0x3b   :  { %615 = vmatpush1.bf16.msra.mxu1 %v2349_v22  ;;  %575 = vmatprep.subr.bf16.mxu0 %v2354_v23 }
  0x3c   :  { %616 = vmatprep.subr.bf16.mxu1 %v2358_v24 }
  0x3d   :  { %1752 = vmatmul.mubr.msk.bf16.gmra.mrb[8].mxu0 %vm127_vm0, %v1929_v25  ;;  %1756 = vmatmul.mubr.msk.bf16.gmra.mrb[8].mxu1 %vm127_vm0, %v1929_v25 }
  0x3e   :  { %576 = vmatpush1.bf16.msra.mxu0 %v2364_v26  ;;  %202 = vmatprep.mubr.bf16.mxu0 %v3208_v0 }
  0x3f   :  { %617 = vmatpush1.bf16.msra.mxu1 %v2368_v27  ;;  %577 = vmatprep.subr.bf16.mxu0 %v2370_v28 }
  0x40   :  { %618 = vmatprep.subr.bf16.mxu1 %v2373_v29  ;;  %275 = vmatprep.mubr.bf16.mxu1 %v3208_v0 }
  0x42   :  { %578 = vmatpush1.bf16.msra.mxu0 %v2378_v30 }
  0x43   :  { %619 = vmatpush1.bf16.msra.mxu1 %v2380_v31  ;;  %579 = vmatprep.subr.bf16.mxu0 %v2388_v33 }
  0x44   :  { %620 = vmatprep.subr.bf16.mxu1 %v2392_v34 }
  0x45   :  { %1753 = vmatmul.mubr.msk.bf16.gmra.mrb[12].mxu0 %vm127_vm0, %v1942_v32  ;;  %1757 = vmatmul.mubr.msk.bf16.gmra.mrb[12].mxu1 %vm127_vm0, %v1942_v32 }
  0x46   :  { %580 = vmatpush1.bf16.msra.mxu0 %v2394_v35  ;;  %599 = vmatprep.mubr.bf16.mxu0 %v3208_v0 }
  0x47   :  { %621 = vmatpush1.bf16.msra.mxu1 %v2396_v36  ;;  %581 = vmatprep.subr.bf16.mxu0 %v2398_v37 }
  0x48   :  { %622 = vmatprep.subr.bf16.mxu1 %v2401_v38  ;;  %640 = vmatprep.mubr.bf16.mxu1 %v3208_v0 }
  0x4a   :  { %582 = vmatpush1.bf16.msra.mxu0 %v2406_v39 }
  0x4b   :  { %623 = vmatpush1.bf16.msra.mxu1 %v2414_v40  ;;  %678 = vmatprep.subr.bf16.mxu0 %v2299_v6 }
  0x4c   :  { %719 = vmatprep.subr.bf16.mxu1 %v2301_v7 }
  0x4d   :  { %600 = vmatmul.mubr.bf16.vlgmr.msra.gmra.mrb[16].mxu0 %v3208_v0 }
  0x4e   :  { %641 = vmatmul.mubr.bf16.vlgmr.msra.gmra.mrb[16].mxu1 %v3208_v0  ;;  %679 = vmatpush1.bf16.msra.mxu0 %v2303_v8 }
  0x4f   :  { %720 = vmatpush1.bf16.msra.mxu1 %v2306_v9  ;;  %680 = vmatprep.subr.bf16.mxu0 %v2310_v10 }
  0x50   :  { %721 = vmatprep.subr.bf16.mxu1 %v2314_v11  ;;  %710 = vmatprep.mubr.bf16.mxu0 %v3208_v0 }
  0x51   :  { %751 = vmatprep.mubr.bf16.mxu1 %v3208_v0  ;;  %v316_v0 = vand.u32 127, %v290_v43 }
  0x52   :  { %681 = vmatpush1.bf16.msra.mxu0 %v2316_v12 }
  0x53   :  { %722 = vmatpush1.bf16.msra.mxu1 %v2318_v13  ;;  %682 = vmatprep.subr.bf16.mxu0 %v2327_v15  ;;  %vm2527_vm4 = vcmp.lt.s32.totalorder %v316_v0, 64 }
  0x54   :  { %723 = vmatprep.subr.bf16.mxu1 %v2330_v16 }
  0x56   :  { %683 = vmatpush1.bf16.msra.mxu0 %v2333_v17 }
  0x57   :  { %724 = vmatpush1.bf16.msra.mxu1 %v2335_v18  ;;  %684 = vmatprep.subr.bf16.mxu0 %v2339_v19 }
  0x58   :  { %725 = vmatprep.subr.bf16.mxu1 %v2342_v20 }
  0x5a   :  { %685 = vmatpush1.bf16.msra.mxu0 %v2346_v21 }
  0x5b   :  { %726 = vmatpush1.bf16.msra.mxu1 %v2349_v22  ;;  %686 = vmatprep.subr.bf16.mxu0 %v2354_v23 }
  0x5c   :  { %727 = vmatprep.subr.bf16.mxu1 %v2358_v24 }
  0x5e   :  { %687 = vmatpush1.bf16.msra.mxu0 %v2364_v26 }
  0x5f   :  { %728 = vmatpush1.bf16.msra.mxu1 %v2368_v27  ;;  %688 = vmatprep.subr.bf16.mxu0 %v2370_v28 }
  0x60   :  { %729 = vmatprep.subr.bf16.mxu1 %v2373_v29 }
  0x62   :  { %689 = vmatpush1.bf16.msra.mxu0 %v2378_v30 }
  0x63   :  { %730 = vmatpush1.bf16.msra.mxu1 %v2380_v31  ;;  %690 = vmatprep.subr.bf16.mxu0 %v2388_v33 }
  0x64   :  { %731 = vmatprep.subr.bf16.mxu1 %v2392_v34 }
  0x66   :  { %691 = vmatpush1.bf16.msra.mxu0 %v2394_v35 }
  0x67   :  { %732 = vmatpush1.bf16.msra.mxu1 %v2396_v36  ;;  %692 = vmatprep.subr.bf16.mxu0 %v2398_v37 }
  0x68   :  { %733 = vmatprep.subr.bf16.mxu1 %v2401_v38 }
  0x6a   :  { %693 = vmatpush1.bf16.msra.mxu0 %v2406_v39 }
  0x6b   :  { %734 = vmatpush1.bf16.msra.mxu1 %v2414_v40  ;;  %789 = vmatprep.subr.bf16.mxu0 %v2299_v6 }
  0x6c   :  { %830 = vmatprep.subr.bf16.mxu1 %v2301_v7 }
 0x100   :  { %v2463_v49 = vpop.f32.mrb[0].mxu0  ;;  %v2465_v50 = vpop.f32.mrb[0].mxu1 }
 0x101   :  { %v2471_v53 = vpop.f32.mrb[1].mxu0  ;;  %v2473_v54 = vpop.f32.mrb[1].mxu1 }
 0x102   :  { %v178_v56 = vpop.f32.mrb[2].mxu0  ;;  %v251_v57 = vpop.f32.mrb[2].mxu1 }
 0x103   :  { %v2478_v58 = vadd.f32 %v178_v56, %v2469_v52  ;;  %v180_v59 = vpop.f32.mrb[3].mxu0  ;;  %v2481_v60 = vadd.f32 %v251_v57, %v2461_v48  ;;  %v253_v61 = vpop.f32.mrb[3].mxu1 }
 0x104   :  { %v2484_v62 = vadd.f32 %v180_v59, %v2475_v55  ;;  %v2487_v63 = vadd.f32 %v253_v61, %v2467_v51 }
 0x105   :  { %3256 = vst [vmem:[#allocation17_spill] sm:$0xff] %v2481_v60 }
 0x106   :  { %3257 = vst [vmem:[#allocation18_spill] sm:$0xff] %v2487_v63 }
 0x108   :  { %v184_v2 = vpop.f32.mrb[4].mxu0  ;;  %v257_v3 = vpop.f32.mrb[4].mxu1 }
 0x109   :  { %v185_v5 = vadd.f32 %v184_v2, %v2469_v52  ;;  %v186_v14 = vpop.f32.mrb[5].mxu0  ;;  %v2494_v25 = vadd.f32 %v257_v3, %v2461_v48  ;;  %v259_v32 = vpop.f32.mrb[5].mxu1  ;;  %v309_v3 = vand.u32 127, %v289_v4 }
 0x10a   :  { %v2499_v44 = vadd.f32 %v186_v14, %v2475_v55  ;;  %v188_v41 = vpop.f32.mrb[6].mxu0  ;;  %v2502_v45 = vadd.f32 %v259_v32, %v2467_v51  ;;  %v261_v46 = vpop.f32.mrb[6].mxu1  ;;  %v302_v14 = vand.u32 127, %v288_v42 }
 0x10b   :  { %v189_v47 = vadd.f32 %v188_v41, %v2469_v52  ;;  %v190_v56 = vpop.f32.mrb[7].mxu0  ;;  %v2506_v57 = vadd.f32 %v261_v46, %v2461_v48  ;;  %v263_v59 = vpop.f32.mrb[7].mxu1  ;;  %vm2515_vm2 = vcmp.lt.s32.totalorder %v309_v3, 64 }
 0x10c   :  { %3258 = vst [vmem:[#allocation19_spill] sm:$0xff] %v2502_v45  ;;  %v2509_v61 = vadd.f32 %v190_v56, %v2475_v55  ;;  %v2512_v2 = vadd.f32 %v263_v59, %v2467_v51  ;;  %vm2523_vm3 = vcmp.lt.s32.totalorder %v302_v14, 64 }
 0x10d   :  { %3259 = vst [vmem:[#allocation20_spill] sm:$0xff] %v2506_v57 }
 0x10e   :  { %3260 = vst [vmem:[#allocation21_spill] sm:$0xff] %v2509_v61  ;;  %3261 = vst [vmem:[#allocation22_spill] sm:$0xff] %v2512_v2 }
 0x110   :  { %v194_v7 = vpop.f32.mrb[8].mxu0  ;;  %v267_v32 = vpop.f32.mrb[8].mxu1 }
 0x111   :  { %v195_v46 = vadd.f32 %v194_v7, %v2469_v52  ;;  %v196_v6 = vpop.f32.mrb[9].mxu0  ;;  %v2521_v56 = vadd.f32 %v267_v32, %v2461_v48  ;;  %v269_v40 = vpop.f32.mrb[9].mxu1 }
 0x112   :  { %v2532_v42 = vadd.f32 %v196_v6, %v2475_v55  ;;  %v198_v43 = vpop.f32.mrb[10].mxu0  ;;  %v2535_v3 = vadd.f32 %v269_v40, %v2467_v51  ;;  %v271_v7 = vpop.f32.mrb[10].mxu1 }
 0x113   :  { %3264 = vst [vmem:[#allocation23_spill] sm:$0xff] %v2521_v56  ;;  %v199_v32 = vadd.f32 %v198_v43, %v2469_v52  ;;  %v200_v39 = vpop.f32.mrb[11].mxu0  ;;  %v2539_v14 = vadd.f32 %v271_v7, %v2461_v48  ;;  %v273_v38 = vpop.f32.mrb[11].mxu1  ;;  %v2543_v0 = vsel %vm339_vm1, %v189_v47, %v195_v46 }
 0x114   :  { %3269 = vst [vmem:[#allocation24_spill] sm:$0xff] %v2532_v42  ;;  %3270 = vst [vmem:[#allocation25_spill] sm:$0xff] %v2535_v3  ;;  %v2550_v40 = vadd.f32 %v200_v39, %v2475_v55  ;;  %v2553_v37 = vadd.f32 %v273_v38, %v2467_v51  ;;  %v2573_v39 = vsel %vm339_vm1, %v195_v46, %v189_v47 }
 0x115   :  { %3271 = vst [vmem:[#allocation26_spill] sm:$0xff] %v2543_v0  ;;  %v2565_v0 = vsel %vm339_vm1, %v185_v5, %v199_v32  ;;  %3274 = vst [vmem:[#allocation29_spill] sm:$0xff] %v2573_v39  ;;  %v2597_v43 = vsel %vm339_vm1, %v199_v32, %v185_v5  ;;  %v175_v5 = vadd.f32 %v2463_v49, %v2469_v52 }
 0x116   :  { %3272 = vst [vmem:[#allocation27_spill] sm:$0xff] %v2550_v40  ;;  %3273 = vst [vmem:[#allocation28_spill] sm:$0xff] %v2553_v37  ;;  %v2615_v32 = vadd.f32 %v2465_v50, %v2461_v48  ;;  %v2623_v3 = vadd.f32 %v2471_v53, %v2475_v55  ;;  %v2627_v47 = vadd.f32 %v2473_v54, %v2467_v51 }
 0x117   :  { %3275 = vst [vmem:[#allocation30_spill] sm:$0xff] %v2597_v43 }
 0x118   :  { %v204_v46 = vpop.f32.mrb[12].mxu0  ;;  %v277_v38 = vpop.f32.mrb[12].mxu1  ;;  %3276 = vst [vmem:[#allocation31_spill] sm:$0xff] %v2615_v32  ;;  %3278 = vst [vmem:[#allocation33_spill] sm:$0xff] %v2623_v3 }
 0x119   :  { %v205_v7 = vadd.f32 %v204_v46, %v2469_v52  ;;  %v2619_v43 = vadd.f32 %v277_v38, %v2461_v48  ;;  %v206_v6 = vpop.f32.mrb[13].mxu0  ;;  %v279_v39 = vpop.f32.mrb[13].mxu1  ;;  %3279 = vst [vmem:[#allocation34_spill] sm:$0xff] %v2627_v47 }
 0x11a   :  { %v2630_v49 = vadd.f32 %v206_v6, %v2475_v55  ;;  %v2633_v50 = vadd.f32 %v279_v39, %v2467_v51  ;;  %v208_v46 = vpop.f32.mrb[14].mxu0  ;;  %v281_v2 = vpop.f32.mrb[14].mxu1 }
 0x11b   :  { %3277 = vst [vmem:[#allocation32_spill] sm:$0xff] %v2619_v43  ;;  %v209_v38 = vadd.f32 %v208_v46, %v2469_v52  ;;  %v2637_v42 = vadd.f32 %v281_v2, %v2461_v48  ;;  %v210_v61 = vpop.f32.mrb[15].mxu0  ;;  %v283_v53 = vpop.f32.mrb[15].mxu1  ;;  %v2642_v54 = vsel %vm339_vm1, %v2478_v58, %v205_v7 }
 0x11c   :  { %3280 = vst [vmem:[#allocation35_spill] sm:$0xff] %v2633_v50  ;;  %v2649_v39 = vadd.f32 %v210_v61, %v2475_v55  ;;  %v2652_v52 = vadd.f32 %v283_v53, %v2467_v51  ;;  %v2671_v51 = vsel %vm339_vm1, %v205_v7, %v2478_v58 }
 0x11d   :  { %3281 = vst [vmem:[#allocation36_spill] sm:$0xff] %v2637_v42  ;;  %v343_v46 = vsel %vm339_vm1, %v175_v5, %v209_v38  ;;  %v345_v55 = vsel %vm2515_vm2, %v2615_v32, %v2637_v42  ;;  %3284 = vst [vmem:[#allocation39_spill] sm:$0xff] %v2671_v51  ;;  %v2695_v61 = vsel %vm339_vm1, %v209_v38, %v175_v5 }
 0x11e   :  { %3282 = vst [vmem:[#allocation37_spill] sm:$0xff] %v2649_v39  ;;  %3283 = vst [vmem:[#allocation38_spill] sm:$0xff] %v2652_v52  ;;  %v344_v53 = vsel %vm2523_vm3, %v2623_v3, %v2649_v39  ;;  %v346_v2 = vsel %vm2527_vm4, %v2627_v47, %v2652_v52 }
 0x11f   :  { %3285 = vst [vmem:[#allocation40_spill] sm:$0xff] %v2695_v61 }
 0x120   :  { %v601_v7 = vpop.f32.mrb[16].mxu0 }
 0x121   :  { %v649_v51 = vadd.f32 %v601_v7, %v343_v46  ;;  %v642_v1 = vpop.f32.mrb[16].mxu1  ;;  %v603_v5 = vpop.f32.mrb[17].mxu0  ;;  %v3291_v7 = vld [vmem:[#allocation11_spill] sm:$0xff] }
 0x122   :  { %v651_v38 = vadd.f32 %v642_v1, %v345_v55  ;;  %v650_v61 = vadd.f32 %v603_v5, %v344_v53  ;;  %v644_v56 = vpop.f32.mrb[17].mxu1  ;;  %v605_v57 = vpop.f32.mrb[18].mxu0  ;;  %v3292_v1 = vld [vmem:[#allocation12_spill] sm:$0xff] }
 0x123   :  { %v1790_v37 = vmul.f32 -1.442695, %v649_v51  ;;  %v652_v48 = vadd.f32 %v644_v56, %v346_v2  ;;  %v606_v32 = vpop.f32.mrb[19].mxu0  ;;  %v646_v42 = vpop.f32.mrb[18].mxu1 }
 0x124   :  { %v1791_v45 = vmul.f32 -1.442695, %v650_v61  ;;  %v647_v40 = vpop.f32.mrb[19].mxu1  ;;  %v3289_v61 = vld [vmem:[#allocation15_spill] sm:$0xff] }
 0x125   :  { %1963 = vpow2.f32 %v1790_v37  ;;  %v1792_v6 = vmul.f32 -1.442695, %v652_v48  ;;  %v3288_v48 = vld [vmem:[#allocation14_spill] sm:$0xff] }
 0x126   :  { %1965 = vpow2.f32 %v1791_v45 }
 0x127   :  { %1967 = vpow2.f32 %v1792_v6  ;;  %v3286_v6 = vmov 0  }
 0x128   :  { %1969 = vtanh.f32 %v651_v38 }
 0x12f   :  { %v1964_v3 = vpop.eup %1963 }
 0x130   :  { %v1966_v39 = vpop.eup %1965  ;;  %v656_v58 = vadd.f32 1.0, %v1964_v3 }
 0x131   :  { %v662_v46 = vadd.f32 1.0, %v1966_v39  ;;  %v1968_v55 = vpop.eup %1967  ;;  %v3287_v39 = vld [vmem:[#allocation13_spill] sm:$0xff] }
 0x132   :  { %1971 = vrcp.f32 %v656_v58  ;;  %v1970_v53 = vpop.eup %1969  ;;  %v669_v32 = vadd.f32 1.0, %v1968_v55  ;;  %v3290_v58 = vld [vmem:[#allocation16_spill] sm:$0xff]  ;;  %v3293_v55 = vsel %vm2515_vm2, %v2481_v60, %v2619_v43 }
 0x133   :  { %1973 = vrcp.f32 %v662_v46 }
 0x134   :  { %1975 = vrcp.f32 %v669_v32 }
 0x13c   :  { %v1972_v57 = vpop.eup %1971 }
 0x13d   :  { %v1974_v51 = vpop.eup %1973  ;;  %v673_v56 = vmul.f32 %v1972_v57, %v1970_v53 }
 0x13e   :  { %v672_v42 = vmul.f32 0.0, %v1974_v51  ;;  %v1976_v37 = vpop.eup %1975 }
 0x140   :  { %v2709_v2 = vadd.f32 %v673_v56, %v672_v42  ;;  %v3294_v56 = vsel %vm2523_vm3, %v2484_v62, %v2630_v49  ;;  %v3295_v42 = vsel %vm2527_vm4, %v2487_v63, %v2633_v50 }
 0x142   :  { %1977 = vtanh.f32 %v2709_v2 }
 0x14c   :  { %v1978_v45 = vpop.eup %1977 }
 0x14d   :  { %v2712_v3 = vmul.f32 %v1978_v45, %v1976_v37 }
 0x14f   :  { %v677_v40 = vpack.c.bf16 %v2712_v3, %v2712_v3 }
 0x151   :  { %711 = vmatmul.mubr.bf16.vlgmr.msra.gmra.mrb[20].mxu0 %v677_v40  ;;  %752 = vmatmul.mubr.bf16.vlgmr.msra.gmra.mrb[20].mxu1 %v677_v40 }
 0x152   :  { %790 = vmatpush1.bf16.msra.mxu0 %v2303_v8  ;;  %831 = vmatpush1.bf16.msra.mxu1 %v2306_v9 }
 0x153   :  { %791 = vmatprep.subr.bf16.mxu0 %v2310_v10  ;;  %832 = vmatprep.subr.bf16.mxu1 %v2314_v11 }
 0x154   :  { %821 = vmatprep.mubr.bf16.mxu0 %v3286_v6  ;;  %862 = vmatprep.mubr.bf16.mxu1 %v3286_v6 }
 0x156   :  { %792 = vmatpush1.bf16.msra.mxu0 %v2316_v12  ;;  %833 = vmatpush1.bf16.msra.mxu1 %v2318_v13 }
 0x157   :  { %793 = vmatprep.subr.bf16.mxu0 %v2327_v15  ;;  %834 = vmatprep.subr.bf16.mxu1 %v2330_v16 }
 0x15a   :  { %794 = vmatpush1.bf16.msra.mxu0 %v2333_v17  ;;  %835 = vmatpush1.bf16.msra.mxu1 %v2335_v18 }
 0x15b   :  { %795 = vmatprep.subr.bf16.mxu0 %v2339_v19  ;;  %836 = vmatprep.subr.bf16.mxu1 %v2342_v20 }
 0x15e   :  { %796 = vmatpush1.bf16.msra.mxu0 %v2346_v21  ;;  %837 = vmatpush1.bf16.msra.mxu1 %v2349_v22 }
 0x15f   :  { %797 = vmatprep.subr.bf16.mxu0 %v2354_v23  ;;  %838 = vmatprep.subr.bf16.mxu1 %v2358_v24 }
 0x162   :  { %798 = vmatpush1.bf16.msra.mxu0 %v2364_v26  ;;  %839 = vmatpush1.bf16.msra.mxu1 %v2368_v27 }
 0x163   :  { %799 = vmatprep.subr.bf16.mxu0 %v2370_v28  ;;  %840 = vmatprep.subr.bf16.mxu1 %v2373_v29 }
 0x166   :  { %800 = vmatpush1.bf16.msra.mxu0 %v2378_v30  ;;  %841 = vmatpush1.bf16.msra.mxu1 %v2380_v31 }
 0x167   :  { %801 = vmatprep.subr.bf16.mxu0 %v2388_v33  ;;  %842 = vmatprep.subr.bf16.mxu1 %v2392_v34 }
 0x16a   :  { %802 = vmatpush1.bf16.msra.mxu0 %v2394_v35  ;;  %843 = vmatpush1.bf16.msra.mxu1 %v2396_v36 }
 0x16b   :  { %803 = vmatprep.subr.bf16.mxu0 %v3287_v39  ;;  %844 = vmatprep.subr.bf16.mxu1 %v3288_v48 }
 0x16e   :  { %804 = vmatpush1.bf16.msra.mxu0 %v3289_v61  ;;  %845 = vmatpush1.bf16.msra.mxu1 %v3290_v58 }
 0x16f   :  { %900 = vmatprep.subr.bf16.mxu0 %v3291_v7  ;;  %941 = vmatprep.subr.bf16.mxu1 %v3292_v1 }
 0x224   :  { %v712_v5 = vpop.f32.mrb[20].mxu0  ;;  %v753_v38 = vpop.f32.mrb[20].mxu1 }
 0x225   :  { %v760_v46 = vadd.f32 %v712_v5, %v2642_v54  ;;  %v762_v53 = vadd.f32 %v753_v38, %v3293_v55  ;;  %v714_v57 = vpop.f32.mrb[21].mxu0  ;;  %v755_v51 = vpop.f32.mrb[21].mxu1 }
 0x226   :  { %v761_v32 = vadd.f32 %v714_v57, %v3294_v56  ;;  %v763_v54 = vadd.f32 %v755_v51, %v3295_v42  ;;  %v716_v37 = vpop.f32.mrb[22].mxu0  ;;  %v757_v45 = vpop.f32.mrb[22].mxu1 }
 0x227   :  { %v1793_v40 = vmul.f32 -1.442695, %v760_v46  ;;  %v717_v5 = vpop.f32.mrb[23].mxu0  ;;  %v758_v47 = vpop.f32.mrb[23].mxu1 }
 0x228   :  { %v1794_v38 = vmul.f32 -1.442695, %v761_v32  ;;  %v1795_v55 = vmul.f32 -1.442695, %v763_v54 }
 0x229   :  { %1979 = vpow2.f32 %v1793_v40 }
 0x22a   :  { %1981 = vpow2.f32 %v1794_v38  ;;  %v3296_v38 = vsel %vm2515_vm2, %v2494_v25, %v2539_v14 }
 0x22b   :  { %1983 = vpow2.f32 %v1795_v55 }
 0x22c   :  { %1985 = vtanh.f32 %v762_v53 }
 0x233   :  { %v1980_v52 = vpop.eup %1979 }
 0x234   :  { %v1982_v60 = vpop.eup %1981  ;;  %v767_v43 = vadd.f32 1.0, %v1980_v52 }
 0x235   :  { %v773_v57 = vadd.f32 1.0, %v1982_v60  ;;  %v1984_v56 = vpop.eup %1983 }
 0x236   :  { %1987 = vrcp.f32 %v767_v43  ;;  %v1986_v63 = vpop.eup %1985  ;;  %v780_v46 = vadd.f32 1.0, %v1984_v56 }
 0x237   :  { %1989 = vrcp.f32 %v773_v57 }
 0x238   :  { %1991 = vrcp.f32 %v780_v46 }
 0x240   :  { %v1988_v51 = vpop.eup %1987 }
 0x241   :  { %v1990_v42 = vpop.eup %1989  ;;  %v784_v37 = vmul.f32 %v1988_v51, %v1986_v63  ;;  %v3297_v51 = vld [vmem:[#allocation27_spill] sm:$0xff] }
 0x242   :  { %v783_v47 = vmul.f32 %v1990_v42, %v2709_v2  ;;  %v1992_v54 = vpop.eup %1991  ;;  %v3298_v42 = vsel %vm2523_vm3, %v2499_v44, %v3297_v51 }
 0x244   :  { %v2767_v32 = vadd.f32 %v784_v37, %v783_v47  ;;  %v3300_v37 = vld [vmem:[#allocation28_spill] sm:$0xff] }
 0x246   :  { %1993 = vtanh.f32 %v2767_v32 }
 0x247   :  { %1995 = vtanh.f32 %v2712_v3 }
 0x250   :  { %v1994_v52 = vpop.eup %1993 }
 0x251   :  { %v787_v45 = vmul.f32 %v1994_v52, %v1992_v54  ;;  %v2781_v63 = vpop.eup %1995 }
 0x253   :  { %v788_v60 = vpack.c.bf16 %v787_v45, %v787_v45  ;;  %1997 = vtanh.f32 %v787_v45 }
 0x255   :  { %822 = vmatmul.mubr.bf16.vlgmr.msra.gmra.mrb[24].mxu0 %v788_v60  ;;  %863 = vmatmul.mubr.bf16.vlgmr.msra.gmra.mrb[24].mxu1 %v788_v60 }
 0x256   :  { %901 = vmatpush1.bf16.msra.mxu0 %v2303_v8  ;;  %942 = vmatpush1.bf16.msra.mxu1 %v2306_v9 }
 0x257   :  { %902 = vmatprep.subr.bf16.mxu0 %v2310_v10  ;;  %943 = vmatprep.subr.bf16.mxu1 %v2314_v11 }
 0x258   :  { %932 = vmatprep.mubr.bf16.mxu0 %v3286_v6  ;;  %973 = vmatprep.mubr.bf16.mxu1 %v3286_v6 }
 0x25a   :  { %903 = vmatpush1.bf16.msra.mxu0 %v2316_v12  ;;  %944 = vmatpush1.bf16.msra.mxu1 %v2318_v13 }
 0x25b   :  { %904 = vmatprep.subr.bf16.mxu0 %v2327_v15  ;;  %945 = vmatprep.subr.bf16.mxu1 %v2330_v16 }
 0x25d   :  { %v2783_v43 = vpop.eup %1997 }
 0x25e   :  { %905 = vmatpush1.bf16.msra.mxu0 %v2333_v17  ;;  %946 = vmatpush1.bf16.msra.mxu1 %v2335_v18 }
 0x25f   :  { %906 = vmatprep.subr.bf16.mxu0 %v2339_v19  ;;  %947 = vmatprep.subr.bf16.mxu1 %v2342_v20 }
 0x262   :  { %907 = vmatpush1.bf16.msra.mxu0 %v2346_v21  ;;  %948 = vmatpush1.bf16.msra.mxu1 %v2349_v22 }
 0x263   :  { %908 = vmatprep.subr.bf16.mxu0 %v2354_v23  ;;  %949 = vmatprep.subr.bf16.mxu1 %v2358_v24 }
 0x266   :  { %909 = vmatpush1.bf16.msra.mxu0 %v2364_v26  ;;  %950 = vmatpush1.bf16.msra.mxu1 %v2368_v27 }
 0x267   :  { %910 = vmatprep.subr.bf16.mxu0 %v2370_v28  ;;  %951 = vmatprep.subr.bf16.mxu1 %v2373_v29 }
 0x26a   :  { %911 = vmatpush1.bf16.msra.mxu0 %v2378_v30  ;;  %952 = vmatpush1.bf16.msra.mxu1 %v2380_v31 }
 0x26b   :  { %912 = vmatprep.subr.bf16.mxu0 %v2388_v33  ;;  %953 = vmatprep.subr.bf16.mxu1 %v2392_v34 }
 0x26e   :  { %913 = vmatpush1.bf16.msra.mxu0 %v2394_v35  ;;  %954 = vmatpush1.bf16.msra.mxu1 %v2396_v36 }
 0x26f   :  { %914 = vmatprep.subr.bf16.mxu0 %v3287_v39  ;;  %955 = vmatprep.subr.bf16.mxu1 %v3288_v48 }
 0x272   :  { %915 = vmatpush1.bf16.msra.mxu0 %v3289_v61  ;;  %956 = vmatpush1.bf16.msra.mxu1 %v3290_v58 }
 0x273   :  { %1011 = vmatprep.subr.bf16.mxu0 %v3291_v7  ;;  %1052 = vmatprep.subr.bf16.mxu1 %v3292_v1  ;;  %v3299_v1 = vld [vmem:[#allocation19_spill] sm:$0xff] }
 0x274   :  { %v3301_v46 = vsel %vm2527_vm4, %v3299_v1, %v3300_v37 }
 0x328   :  { %v823_v53 = vpop.f32.mrb[24].mxu0  ;;  %v864_v40 = vpop.f32.mrb[24].mxu1 }
 0x329   :  { %v871_v5 = vadd.f32 %v823_v53, %v2565_v0  ;;  %v873_v55 = vadd.f32 %v864_v40, %v3296_v38  ;;  %v825_v57 = vpop.f32.mrb[25].mxu0  ;;  %v866_v56 = vpop.f32.mrb[25].mxu1 }
 0x32a   :  { %v872_v7 = vadd.f32 %v825_v57, %v3298_v42  ;;  %v874_v0 = vadd.f32 %v866_v56, %v3301_v46  ;;  %v827_v47 = vpop.f32.mrb[26].mxu0  ;;  %v868_v54 = vpop.f32.mrb[26].mxu1 }
 0x32b   :  { %v1796_v52 = vmul.f32 -1.442695, %v871_v5  ;;  %v828_v45 = vpop.f32.mrb[27].mxu0  ;;  %v869_v60 = vpop.f32.mrb[27].mxu1 }
 0x32c   :  { %v1797_v53 = vmul.f32 -1.442695, %v872_v7  ;;  %v1798_v40 = vmul.f32 -1.442695, %v874_v0 }
 0x32d   :  { %1999 = vpow2.f32 %v1796_v52 }
 0x32e   :  { %2001 = vpow2.f32 %v1797_v53 }
 0x32f   :  { %2003 = vpow2.f32 %v1798_v40 }
 0x330   :  { %2005 = vtanh.f32 %v873_v55 }
 0x337   :  { %v2000_v38 = vpop.eup %1999 }
 0x338   :  { %v2002_v3 = vpop.eup %2001  ;;  %v878_v2 = vadd.f32 1.0, %v2000_v38 }
 0x339   :  { %v884_v57 = vadd.f32 1.0, %v2002_v3  ;;  %v2004_v42 = vpop.eup %2003 }
 0x33a   :  { %2007 = vrcp.f32 %v878_v2  ;;  %v2006_v50 = vpop.eup %2005  ;;  %v891_v5 = vadd.f32 1.0, %v2004_v42 }
 0x33b   :  { %2009 = vrcp.f32 %v884_v57 }
 0x33c   :  { %2011 = vrcp.f32 %v891_v5 }
 0x344   :  { %v2008_v56 = vpop.eup %2007 }
 0x345   :  { %v2010_v46 = vpop.eup %2009  ;;  %v895_v47 = vmul.f32 %v2008_v56, %v2006_v50 }
 0x346   :  { %v894_v54 = vmul.f32 %v2010_v46, %v2767_v32  ;;  %v2012_v0 = vpop.eup %2011 }
 0x348   :  { %v2830_v7 = vadd.f32 %v895_v47, %v894_v54 }
 0x34a   :  { %2013 = vtanh.f32 %v2830_v7 }
 0x354   :  { %v2014_v52 = vpop.eup %2013 }
 0x355   :  { %v2833_v45 = vmul.f32 %v2014_v52, %v2012_v0 }
 0x357   :  { %v899_v2 = vpack.c.bf16 %v2833_v45, %v2833_v45 }
 0x359   :  { %933 = vmatmul.mubr.bf16.vlgmr.msra.gmra.mrb[28].mxu0 %v899_v2  ;;  %974 = vmatmul.mubr.bf16.vlgmr.msra.gmra.mrb[28].mxu1 %v899_v2 }
 0x35a   :  { %1012 = vmatpush1.bf16.msra.mxu0 %v2303_v8  ;;  %1053 = vmatpush1.bf16.msra.mxu1 %v2306_v9  ;;  %v2869_v8 = vld [vmem:[#allocation2 + $0x4] ss:$16 sps:$4 sm:$0xff]   ;;  %v2872_v9 = vld [vmem:[#allocation2 + $0xc] ss:$16 sps:$4 sm:$0xff]  }
 0x35b   :  { %1013 = vmatprep.subr.bf16.mxu0 %v2310_v10  ;;  %1054 = vmatprep.subr.bf16.mxu1 %v2314_v11 }
 0x35c   :  { %1043 = vmatprep.mubr.bf16.mxu0 %v3286_v6  ;;  %1084 = vmatprep.mubr.bf16.mxu1 %v3286_v6 }
 0x35e   :  { %1014 = vmatpush1.bf16.msra.mxu0 %v2316_v12  ;;  %1055 = vmatpush1.bf16.msra.mxu1 %v2318_v13  ;;  %v3302_v12 = vld [vmem:[#allocation26_spill] sm:$0xff] }
 0x35f   :  { %1015 = vmatprep.subr.bf16.mxu0 %v2327_v15  ;;  %1056 = vmatprep.subr.bf16.mxu1 %v2330_v16  ;;  %v3303_v15 = vld [vmem:[#allocation20_spill] sm:$0xff]  ;;  %v3304_v16 = vld [vmem:[#allocation23_spill] sm:$0xff] }
 0x362   :  { %1016 = vmatpush1.bf16.msra.mxu0 %v2333_v17  ;;  %1057 = vmatpush1.bf16.msra.mxu1 %v2335_v18  ;;  %v3305_v17 = vsel %vm2515_vm2, %v3303_v15, %v3304_v16 }
 0x363   :  { %1017 = vmatprep.subr.bf16.mxu0 %v2339_v19  ;;  %1058 = vmatprep.subr.bf16.mxu1 %v2342_v20 }
 0x366   :  { %1018 = vmatpush1.bf16.msra.mxu0 %v2346_v21  ;;  %1059 = vmatpush1.bf16.msra.mxu1 %v2349_v22  ;;  %v3306_v21 = vld [vmem:[#allocation21_spill] sm:$0xff]  ;;  %v3307_v22 = vld [vmem:[#allocation24_spill] sm:$0xff] }
 0x367   :  { %1019 = vmatprep.subr.bf16.mxu0 %v2354_v23  ;;  %1060 = vmatprep.subr.bf16.mxu1 %v2358_v24  ;;  %v3308_v23 = vsel %vm2523_vm3, %v3306_v21, %v3307_v22 }
 0x36a   :  { %1020 = vmatpush1.bf16.msra.mxu0 %v2364_v26  ;;  %1061 = vmatpush1.bf16.msra.mxu1 %v2368_v27  ;;  %v3309_v26 = vld [vmem:[#allocation22_spill] sm:$0xff]  ;;  %v3310_v27 = vld [vmem:[#allocation25_spill] sm:$0xff] }
 0x36b   :  { %1021 = vmatprep.subr.bf16.mxu0 %v2370_v28  ;;  %1062 = vmatprep.subr.bf16.mxu1 %v2373_v29  ;;  %v3311_v28 = vsel %vm2527_vm4, %v3309_v26, %v3310_v27 }
 0x36e   :  { %1022 = vmatpush1.bf16.msra.mxu0 %v2378_v30  ;;  %1063 = vmatpush1.bf16.msra.mxu1 %v2380_v31 }
 0x36f   :  { %1023 = vmatprep.subr.bf16.mxu0 %v2388_v33  ;;  %1064 = vmatprep.subr.bf16.mxu1 %v2392_v34 }
 0x372   :  { %1024 = vmatpush1.bf16.msra.mxu0 %v2394_v35  ;;  %1065 = vmatpush1.bf16.msra.mxu1 %v2396_v36 }
 0x373   :  { %1025 = vmatprep.subr.bf16.mxu0 %v3287_v39  ;;  %1066 = vmatprep.subr.bf16.mxu1 %v3288_v48 }
 0x376   :  { %1026 = vmatpush1.bf16.msra.mxu0 %v3289_v61  ;;  %1067 = vmatpush1.bf16.msra.mxu1 %v3290_v58 }
 0x377   :  { %1122 = vmatprep.subr.bf16.mxu0 %v2869_v8  ;;  %1163 = vmatprep.subr.bf16.mxu1 %v2872_v9 }
 0x42c   :  { %v934_v10 = vpop.f32.mrb[28].mxu0  ;;  %v975_v11 = vpop.f32.mrb[28].mxu1 }
 0x42d   :  { %v982_v13 = vadd.f32 %v934_v10, %v3302_v12  ;;  %v984_v18 = vadd.f32 %v975_v11, %v3305_v17  ;;  %v936_v19 = vpop.f32.mrb[29].mxu0  ;;  %v977_v20 = vpop.f32.mrb[29].mxu1 }
 0x42e   :  { %v983_v24 = vadd.f32 %v936_v19, %v3308_v23  ;;  %v985_v29 = vadd.f32 %v977_v20, %v3311_v28  ;;  %v938_v50 = vpop.f32.mrb[30].mxu0  ;;  %v979_v32 = vpop.f32.mrb[30].mxu1  ;;  %v2899_v19 = vld [vmem:[#allocation2 + $0x8] ss:$16 sps:$4 sm:$0xff]   ;;  %v2905_v20 = vld [vmem:[#allocation2 + $0x2c] ss:$16 sps:$4 sm:$0xff]  }
 0x42f   :  { %v1799_v3 = vmul.f32 -1.442695, %v982_v13  ;;  %v939_v55 = vpop.f32.mrb[31].mxu0  ;;  %v980_v60 = vpop.f32.mrb[31].mxu1  ;;  %v2913_v23 = vld [vmem:[#allocation2 + $0x28] ss:$16 sps:$4 sm:$0xff]  }
 0x430   :  { %v1800_v53 = vmul.f32 -1.442695, %v983_v24  ;;  %v1801_v40 = vmul.f32 -1.442695, %v985_v29  ;;  %v2916_v24 = vld [vmem:[#allocation2 + $0x44] ss:$16 sps:$4 sm:$0xff]  }
 0x431   :  { %2015 = vpow2.f32 %v1799_v3  ;;  %v2919_v28 = vld [vmem:[#allocation2 + $0x4c] ss:$16 sps:$4 sm:$0xff]   ;;  %v2928_v3 = vld [vmem:[#allocation2 + $0x40] ss:$16 sps:$4 sm:$0xff]   ;;  %v2931_v55 = vld [vmem:[#allocation2 + $0x48] ss:$16 sps:$4 sm:$0xff]  }
 0x432   :  { %2017 = vpow2.f32 %v1800_v53  ;;  %v2936_v53 = vld [vmem:[#allocation2 + $0x64] ss:$16 sps:$4 sm:$0xff]  }
 0x433   :  { %2019 = vpow2.f32 %v1801_v40  ;;  %v2939_v40 = vld [vmem:[#allocation2 + $0x6c] ss:$16 sps:$4 sm:$0xff]  }
 0x434   :  { %2021 = vtanh.f32 %v984_v18  ;;  %v2896_v18 = vld [vmem:[#allocation2] ss:$16 sps:$4 sm:$0xff]  }
 0x43b   :  { %v2016_v38 = vpop.eup %2015 }
 0x43c   :  { %v2018_v57 = vpop.eup %2017  ;;  %v989_v42 = vadd.f32 1.0, %v2016_v38  ;;  %v2943_v38 = vld [vmem:[#allocation2 + $0x60] ss:$16 sps:$4 sm:$0xff]  }
 0x43d   :  { %v995_v56 = vadd.f32 1.0, %v2018_v57  ;;  %v2020_v46 = vpop.eup %2019  ;;  %v2946_v57 = vld [vmem:[#allocation2 + $0x68] ss:$16 sps:$4 sm:$0xff]  }
 0x43e   :  { %2023 = vrcp.f32 %v989_v42  ;;  %v2022_v47 = vpop.eup %2021  ;;  %v1002_v52 = vadd.f32 1.0, %v2020_v46  ;;  %v2949_v42 = vld [vmem:[#allocation2 + $0x84] ss:$16 sps:$4 sm:$0xff]   ;;  %v3312_v46 = vpack.c.bf16 %v2781_v63, %v2783_v43 }
 0x43f   :  { %2025 = vrcp.f32 %v995_v56  ;;  %v2952_v56 = vld [vmem:[#allocation2 + $0x8c] ss:$16 sps:$4 sm:$0xff]  }
 0x440   :  { %2027 = vrcp.f32 %v1002_v52  ;;  %v3316_v52 = vsel %vm2527_vm4, %v3310_v27, %v3309_v26 }
 0x448   :  { %v2024_v5 = vpop.eup %2023 }
 0x449   :  { %v2026_v54 = vpop.eup %2025  ;;  %v1006_v0 = vmul.f32 %v2024_v5, %v2022_v47  ;;  %v2959_v47 = vld [vmem:[#allocation2 + $0x80] ss:$16 sps:$4 sm:$0xff]   ;;  %v2962_v5 = vld [vmem:[#allocation2 + $0x88] ss:$16 sps:$4 sm:$0xff]  }
 0x44a   :  { %v1005_v2 = vmul.f32 %v2026_v54, %v2830_v7  ;;  %v2028_v11 = vpop.eup %2027  ;;  %v2902_v7 = vld [vmem:[#allocation2 + $0x24] ss:$16 sps:$4 sm:$0xff]  }
 0x44b   :  { %v2965_v54 = vld [vmem:[#allocation2 + $0xa4] ss:$16 sps:$4 sm:$0xff]  }
 0x44c   :  { %v2892_v10 = vadd.f32 %v1006_v0, %v1005_v2  ;;  %v2968_v0 = vld [vmem:[#allocation2 + $0xac] ss:$16 sps:$4 sm:$0xff]  }
 0x44e   :  { %2029 = vtanh.f32 %v2892_v10 }
 0x44f   :  { %2031 = vtanh.f32 %v2833_v45  ;;  %v2910_v45 = vld [vmem:[#allocation2 + $0x20] ss:$16 sps:$4 sm:$0xff]  }
 0x458   :  { %v2030_v12 = vpop.eup %2029 }
 0x459   :  { %v1009_v13 = vmul.f32 %v2030_v12, %v2028_v11  ;;  %v2922_v29 = vpop.eup %2031 }
 0x45b   :  { %v1010_v17 = vpack.c.bf16 %v1009_v13, %v1009_v13  ;;  %2033 = vtanh.f32 %v1009_v13 }
 0x45d   :  { %1044 = vmatmul.mubr.bf16.vlgmr.msra.gmra.mrb[32].mxu0 %v1010_v17  ;;  %1085 = vmatmul.mubr.bf16.vlgmr.msra.gmra.mrb[32].mxu1 %v1010_v17 }
 0x45e   :  { %1123 = vmatpush1.bf16.msra.mxu0 %v2896_v18  ;;  %1164 = vmatpush1.bf16.msra.mxu1 %v2899_v19 }
 0x45f   :  { %1124 = vmatprep.subr.bf16.mxu0 %v2902_v7  ;;  %1165 = vmatprep.subr.bf16.mxu1 %v2905_v20 }
 0x460   :  { %1154 = vmatprep.mubr.bf16.mxu0 %v3286_v6  ;;  %1195 = vmatprep.mubr.bf16.mxu1 %v3286_v6 }
 0x462   :  { %1125 = vmatpush1.bf16.msra.mxu0 %v2910_v45  ;;  %1166 = vmatpush1.bf16.msra.mxu1 %v2913_v23 }
 0x463   :  { %1126 = vmatprep.subr.bf16.mxu0 %v2916_v24  ;;  %1167 = vmatprep.subr.bf16.mxu1 %v2919_v28 }
 0x465   :  { %v2924_v50 = vpop.eup %2033 }
 0x466   :  { %v1468_v32 = vpack.c.bf16 %v2922_v29, %v2924_v50  ;;  %1127 = vmatpush1.bf16.msra.mxu0 %v2928_v3  ;;  %1168 = vmatpush1.bf16.msra.mxu1 %v2931_v55 }
 0x467   :  { %1128 = vmatprep.subr.bf16.mxu0 %v2936_v53  ;;  %1169 = vmatprep.subr.bf16.mxu1 %v2939_v40 }
 0x468   :  { %1494 = vrot.lane.b32.xlu1 %v1468_v32, %s2215_s2 }
 0x46a   :  { %1129 = vmatpush1.bf16.msra.mxu0 %v2943_v38  ;;  %1170 = vmatpush1.bf16.msra.mxu1 %v2946_v57 }
 0x46b   :  { %1130 = vmatprep.subr.bf16.mxu0 %v2949_v42  ;;  %1171 = vmatprep.subr.bf16.mxu1 %v2952_v56 }
 0x46c   :  { %1496 = vrot.lane.b32.xlu1 %v3312_v46, %s2215_s2 }
 0x46e   :  { %1131 = vmatpush1.bf16.msra.mxu0 %v2959_v47  ;;  %1172 = vmatpush1.bf16.msra.mxu1 %v2962_v5 }
 0x46f   :  { %1132 = vmatprep.subr.bf16.mxu0 %v2965_v54  ;;  %1173 = vmatprep.subr.bf16.mxu1 %v2968_v0 }
 0x472   :  { %1133 = vmatpush1.bf16.msra.mxu0 %v2378_v30  ;;  %1174 = vmatpush1.bf16.msra.mxu1 %v2380_v31 }
 0x473   :  { %1134 = vmatprep.subr.bf16.mxu0 %v2388_v33  ;;  %1175 = vmatprep.subr.bf16.mxu1 %v2392_v34  ;;  %v3313_v33 = vld [vmem:[#allocation29_spill] sm:$0xff] }
 0x476   :  { %1135 = vmatpush1.bf16.msra.mxu0 %v2394_v35  ;;  %1176 = vmatpush1.bf16.msra.mxu1 %v2396_v36  ;;  %v3314_v35 = vsel %vm2515_vm2, %v3304_v16, %v3303_v15 }
 0x477   :  { %1136 = vmatprep.subr.bf16.mxu0 %v3287_v39  ;;  %1177 = vmatprep.subr.bf16.mxu1 %v3288_v48 }
 0x47a   :  { %1137 = vmatpush1.bf16.msra.mxu0 %v3289_v61  ;;  %1178 = vmatpush1.bf16.msra.mxu1 %v3290_v58  ;;  %v3315_v61 = vsel %vm2523_vm3, %v3307_v22, %v3306_v21 }
 0x47b   :  { %1233 = vmatprep.subr.bf16.mxu0 %v2869_v8  ;;  %1274 = vmatprep.subr.bf16.mxu1 %v2872_v9 }
 0x530   :  { %v1045_v30 = vpop.f32.mrb[32].mxu0  ;;  %v1086_v31 = vpop.f32.mrb[32].mxu1 }
 0x531   :  { %v1093_v34 = vadd.f32 %v1045_v30, %v3313_v33  ;;  %v1095_v36 = vadd.f32 %v1086_v31, %v3314_v35  ;;  %v1047_v39 = vpop.f32.mrb[33].mxu0  ;;  %v1088_v48 = vpop.f32.mrb[33].mxu1 }
 0x532   :  { %v1094_v58 = vadd.f32 %v1047_v39, %v3315_v61  ;;  %v1096_v2 = vadd.f32 %v1088_v48, %v3316_v52  ;;  %v1049_v11 = vpop.f32.mrb[34].mxu0  ;;  %v1090_v12 = vpop.f32.mrb[34].mxu1 }
 0x533   :  { %v1802_v13 = vmul.f32 -1.442695, %v1093_v34  ;;  %v1050_v17 = vpop.f32.mrb[35].mxu0  ;;  %v1091_v15 = vpop.f32.mrb[35].mxu1  ;;  %v3035_v11 = vld [vmem:[#allocation2 + $0xc4] ss:$16 sps:$4 sm:$0xff]  }
 0x534   :  { %v1803_v16 = vmul.f32 -1.442695, %v1094_v58  ;;  %v1804_v32 = vmul.f32 -1.442695, %v1096_v2  ;;  %v3032_v2 = vld [vmem:[#allocation2 + $0xa8] ss:$16 sps:$4 sm:$0xff]  }
 0x535   :  { %2035 = vpow2.f32 %v1802_v13  ;;  %v3038_v12 = vld [vmem:[#allocation2 + $0xcc] ss:$16 sps:$4 sm:$0xff]   ;;  %v3041_v13 = vld [vmem:[#allocation2 + $0xc0] ss:$16 sps:$4 sm:$0xff]   ;;  %v3044_v17 = vld [vmem:[#allocation2 + $0xc8] ss:$16 sps:$4 sm:$0xff]  }
 0x536   :  { %2037 = vpow2.f32 %v1803_v16  ;;  %v3047_v15 = vld [vmem:[#allocation2 + $0xe4] ss:$16 sps:$4 sm:$0xff]   ;;  %v3050_v16 = vld [vmem:[#allocation2 + $0xec] ss:$16 sps:$4 sm:$0xff]  }
 0x537   :  { %2039 = vpow2.f32 %v1804_v32  ;;  %v3053_v32 = vld [vmem:[#allocation2 + $0xe0] ss:$16 sps:$4 sm:$0xff]  }
 0x538   :  { %2041 = vtanh.f32 %v1095_v36 }
 0x53f   :  { %v2036_v46 = vpop.eup %2035 }
 0x540   :  { %v2038_v30 = vpop.eup %2037  ;;  %v1100_v31 = vadd.f32 1.0, %v2036_v46  ;;  %v3056_v46 = vld [vmem:[#allocation2 + $0xe8] ss:$16 sps:$4 sm:$0xff]  }
 0x541   :  { %v1106_v21 = vadd.f32 1.0, %v2038_v30  ;;  %v2040_v22 = vpop.eup %2039 }
 0x542   :  { %2043 = vrcp.f32 %v1100_v31  ;;  %v2042_v26 = vpop.eup %2041  ;;  %v1113_v34 = vadd.f32 1.0, %v2040_v22 }
 0x543   :  { %2045 = vrcp.f32 %v1106_v21  ;;  %v3317_v21 = vld [vmem:[#allocation30_spill] sm:$0xff] }
 0x544   :  { %2047 = vrcp.f32 %v1113_v34  ;;  %v3319_v34 = vsel %vm2523_vm3, %v3297_v51, %v2499_v44 }
 0x54c   :  { %v2044_v27 = vpop.eup %2043 }
 0x54d   :  { %v2046_v33 = vpop.eup %2045  ;;  %v1117_v35 = vmul.f32 %v2044_v27, %v2042_v26  ;;  %v3318_v26 = vsel %vm2515_vm2, %v2539_v14, %v2494_v25 }
 0x54e   :  { %v1116_v39 = vmul.f32 %v2046_v33, %v2892_v10  ;;  %v2048_v61 = vpop.eup %2047  ;;  %v3029_v10 = vld [vmem:[#allocation2 + $0xa0] ss:$16 sps:$4 sm:$0xff]  }
 0x550   :  { %v3000_v48 = vadd.f32 %v1117_v35, %v1116_v39 }
 0x552   :  { %2049 = vtanh.f32 %v3000_v48 }
 0x55c   :  { %v2050_v58 = vpop.eup %2049 }
 0x55d   :  { %v3003_v52 = vmul.f32 %v2050_v58, %v2048_v61 }
 0x55f   :  { %v1121_v36 = vpack.c.bf16 %v3003_v52, %v3003_v52 }
 0x561   :  { %1155 = vmatmul.mubr.bf16.vlgmr.msra.gmra.mrb[36].mxu0 %v1121_v36  ;;  %1196 = vmatmul.mubr.bf16.vlgmr.msra.gmra.mrb[36].mxu1 %v1121_v36 }
 0x562   :  { %1234 = vmatpush1.bf16.msra.mxu0 %v2896_v18  ;;  %1275 = vmatpush1.bf16.msra.mxu1 %v2899_v19 }
 0x563   :  { %1235 = vmatprep.subr.bf16.mxu0 %v2902_v7  ;;  %1276 = vmatprep.subr.bf16.mxu1 %v2905_v20 }
 0x564   :  { %1265 = vmatprep.mubr.bf16.mxu0 %v3286_v6  ;;  %1306 = vmatprep.mubr.bf16.mxu1 %v3286_v6 }
 0x566   :  { %1236 = vmatpush1.bf16.msra.mxu0 %v2910_v45  ;;  %1277 = vmatpush1.bf16.msra.mxu1 %v2913_v23 }
 0x567   :  { %1237 = vmatprep.subr.bf16.mxu0 %v2916_v24  ;;  %1278 = vmatprep.subr.bf16.mxu1 %v2919_v28 }
 0x56a   :  { %1238 = vmatpush1.bf16.msra.mxu0 %v2928_v3  ;;  %1279 = vmatpush1.bf16.msra.mxu1 %v2931_v55 }
 0x56b   :  { %1239 = vmatprep.subr.bf16.mxu0 %v2936_v53  ;;  %1280 = vmatprep.subr.bf16.mxu1 %v2939_v40 }
 0x56e   :  { %1240 = vmatpush1.bf16.msra.mxu0 %v2943_v38  ;;  %1281 = vmatpush1.bf16.msra.mxu1 %v2946_v57 }
 0x56f   :  { %1241 = vmatprep.subr.bf16.mxu0 %v2949_v42  ;;  %1282 = vmatprep.subr.bf16.mxu1 %v2952_v56 }
 0x572   :  { %1242 = vmatpush1.bf16.msra.mxu0 %v2959_v47  ;;  %1283 = vmatpush1.bf16.msra.mxu1 %v2962_v5 }
 0x573   :  { %1243 = vmatprep.subr.bf16.mxu0 %v2965_v54  ;;  %1284 = vmatprep.subr.bf16.mxu1 %v2968_v0 }
 0x576   :  { %1244 = vmatpush1.bf16.msra.mxu0 %v3029_v10  ;;  %1285 = vmatpush1.bf16.msra.mxu1 %v3032_v2 }
 0x577   :  { %1245 = vmatprep.subr.bf16.mxu0 %v3035_v11  ;;  %1286 = vmatprep.subr.bf16.mxu1 %v3038_v12 }
 0x57a   :  { %1246 = vmatpush1.bf16.msra.mxu0 %v3041_v13  ;;  %1287 = vmatpush1.bf16.msra.mxu1 %v3044_v17 }
 0x57b   :  { %1247 = vmatprep.subr.bf16.mxu0 %v3047_v15  ;;  %1288 = vmatprep.subr.bf16.mxu1 %v3050_v16 }
 0x57e   :  { %1248 = vmatpush1.bf16.msra.mxu0 %v3053_v32  ;;  %1289 = vmatpush1.bf16.msra.mxu1 %v3056_v46 }
 0x57f   :  { %1344 = vmatprep.subr.bf16.mxu0 %v2869_v8  ;;  %1385 = vmatprep.subr.bf16.mxu1 %v2872_v9  ;;  %v3320_v9 = vsel %vm2527_vm4, %v3300_v37, %v3299_v1 }
 0x634   :  { %v1156_v30 = vpop.f32.mrb[36].mxu0  ;;  %v1197_v31 = vpop.f32.mrb[36].mxu1 }
 0x635   :  { %v1204_v22 = vadd.f32 %v1156_v30, %v3317_v21  ;;  %v1206_v27 = vadd.f32 %v1197_v31, %v3318_v26  ;;  %v1158_v33 = vpop.f32.mrb[37].mxu0  ;;  %v1199_v35 = vpop.f32.mrb[37].mxu1 }
 0x636   :  { %v1205_v8 = vadd.f32 %v1158_v33, %v3319_v34  ;;  %v1207_v39 = vadd.f32 %v1199_v35, %v3320_v9  ;;  %v1160_v61 = vpop.f32.mrb[38].mxu0  ;;  %v1201_v58 = vpop.f32.mrb[38].mxu1 }
 0x637   :  { %v1805_v36 = vmul.f32 -1.442695, %v1204_v22  ;;  %v1161_v30 = vpop.f32.mrb[39].mxu0  ;;  %v1202_v25 = vpop.f32.mrb[39].mxu1 }
 0x638   :  { %v1806_v14 = vmul.f32 -1.442695, %v1205_v8  ;;  %v1807_v31 = vmul.f32 -1.442695, %v1207_v39 }
 0x639   :  { %2051 = vpow2.f32 %v1805_v36 }
 0x63a   :  { %2053 = vpow2.f32 %v1806_v14 }
 0x63b   :  { %2055 = vpow2.f32 %v1807_v31 }
 0x63c   :  { %2057 = vtanh.f32 %v1206_v27 }
 0x643   :  { %v2052_v21 = vpop.eup %2051 }
 0x644   :  { %v2054_v26 = vpop.eup %2053  ;;  %v1211_v60 = vadd.f32 1.0, %v2052_v21 }
 0x645   :  { %v1217_v44 = vadd.f32 1.0, %v2054_v26  ;;  %v2056_v51 = vpop.eup %2055 }
 0x646   :  { %2059 = vrcp.f32 %v1211_v60  ;;  %v2058_v1 = vpop.eup %2057  ;;  %v1224_v22 = vadd.f32 1.0, %v2056_v51  ;;  %v3329_v51 = vpack.c.bf16 %v2783_v43, %v2781_v63  ;;  %v1959_v63 = vld [vmem:[#allocation5 + $0x20] sm:$0xff]   ;;  %v1960_v43 = vld [vmem:[#allocation5 + $0x28] sm:$0xff]  }
 0x647   :  { %2061 = vrcp.f32 %v1217_v44  ;;  %v1956_v44 = vld [vmem:[#allocation5 + $0x8] sm:$0xff]  }
 0x648   :  { %2063 = vrcp.f32 %v1224_v22 }
 0x650   :  { %v2060_v37 = vpop.eup %2059 }
 0x651   :  { %v2062_v33 = vpop.eup %2061  ;;  %v1228_v35 = vmul.f32 %v2060_v37, %v2058_v1  ;;  %v1957_v1 = vld [vmem:[#allocation5 + $0x10] sm:$0xff]   ;;  %v1958_v37 = vld [vmem:[#allocation5 + $0x18] sm:$0xff]  }
 0x652   :  { %v1227_v34 = vmul.f32 %v2062_v33, %v3000_v48  ;;  %v2064_v9 = vpop.eup %2063  ;;  %v3330_v33 = vpack.c.bf16 %v2924_v50, %v2922_v29  ;;  %v3332_v50 = vld [vmem:[#allocation36_spill] sm:$0xff] }
 0x654   :  { %v3078_v8 = vadd.f32 %v1228_v35, %v1227_v34  ;;  %v1961_v35 = vld [vmem:[#allocation5 + $0x30] sm:$0xff]  }
 0x656   :  { %2065 = vtanh.f32 %v3078_v8 }
 0x657   :  { %2067 = vtanh.f32 %v3003_v52 }
 0x660   :  { %v2066_v39 = vpop.eup %2065 }
 0x661   :  { %v1231_v61 = vmul.f32 %v2066_v39, %v2064_v9  ;;  %v3092_v48 = vpop.eup %2067  ;;  %v3333_v9 = vld [vmem:[#allocation31_spill] sm:$0xff] }
 0x662   :  { %v3334_v39 = vsel %vm2515_vm2, %v3332_v50, %v3333_v9 }
 0x663   :  { %v1232_v60 = vpack.c.bf16 %v1231_v61, %v1231_v61  ;;  %2069 = vtanh.f32 %v1231_v61 }
 0x665   :  { %1266 = vmatmul.mubr.bf16.vlgmr.msra.gmra.mrb[40].mxu0 %v1232_v60  ;;  %1307 = vmatmul.mubr.bf16.vlgmr.msra.gmra.mrb[40].mxu1 %v1232_v60 }
 0x666   :  { %1345 = vmatpush1.bf16.msra.mxu0 %v2896_v18  ;;  %1386 = vmatpush1.bf16.msra.mxu1 %v2899_v19 }
 0x667   :  { %1346 = vmatprep.subr.bf16.mxu0 %v2902_v7  ;;  %1387 = vmatprep.subr.bf16.mxu1 %v2905_v20  ;;  %v1955_v7 = vld [vmem:[#allocation5] sm:$0xff]  }
 0x668   :  { %1376 = vmatprep.mubr.bf16.mxu0 %v3286_v6  ;;  %1417 = vmatprep.mubr.bf16.mxu1 %v3286_v6 }
 0x66a   :  { %1347 = vmatpush1.bf16.msra.mxu0 %v2910_v45  ;;  %1388 = vmatpush1.bf16.msra.mxu1 %v2913_v23  ;;  %v3321_v23 = vld [vmem:[#allocation39_spill] sm:$0xff] }
 0x66b   :  { %1348 = vmatprep.subr.bf16.mxu0 %v2916_v24  ;;  %1389 = vmatprep.subr.bf16.mxu1 %v2919_v28  ;;  %v3322_v28 = vld [vmem:[#allocation32_spill] sm:$0xff] }
 0x66d   :  { %v3094_v18 = vpop.eup %2069 }
 0x66e   :  { %1349 = vmatpush1.bf16.msra.mxu0 %v2928_v3  ;;  %1390 = vmatpush1.bf16.msra.mxu1 %v2931_v55  ;;  %v1464_v19 = vpack.c.bf16 %v3094_v18, %v3092_v48  ;;  %v1467_v6 = vpack.c.bf16 %v3092_v48, %v3094_v18  ;;  %v3323_v3 = vld [vmem:[#allocation17_spill] sm:$0xff]  ;;  %v1830_v48 = vld [vmem:[%s3206_s5] ss:$0 sm:$0xff]  ;;  %s2218_s5 = smov [#allocation7]  }
 0x66f   :  { %1350 = vmatprep.subr.bf16.mxu0 %v2936_v53  ;;  %1391 = vmatprep.subr.bf16.mxu1 %v2939_v40  ;;  %v3324_v55 = vsel %vm2515_vm2, %v3322_v28, %v3323_v3  ;;  %v3339_v28 = vld [vmem:[#allocation34_spill] sm:$0xff]  ;;  %s1729_s16 = sshll.u32 %s2218_s5, 4  ;;  %s1730_s16 = int_to_ptr.vmem [resolvable:$true] %s1729_s16 }
 0x670   :  { %s2183_s17 = scalar_lea.vmem %s1730_s16, 1024  ;;  %p2188_p3 = scmp.lt.s32.totalorder %s1730_s16, %s1730_s16 }
 0x671   :  { %p2184_p2 = scmp.ne.s32.totalorder %s1730_s16, %s2183_s17  ;;  %p2189_p4 = scmp.lt.s32.totalorder %s2183_s17, %s2183_s17 }
 0x672   :  { %1351 = vmatpush1.bf16.msra.mxu0 %v2943_v38  ;;  %1392 = vmatpush1.bf16.msra.mxu1 %v2946_v57  ;;  %v3325_v57 = vsel %vm2523_vm3, %v2630_v49, %v2484_v62 }
 0x673   :  { %1352 = vmatprep.subr.bf16.mxu0 %v2949_v42  ;;  %1393 = vmatprep.subr.bf16.mxu1 %v2952_v56  ;;  %v3326_v56 = vld [vmem:[#allocation35_spill] sm:$0xff]  ;;  %p2190_p5 = por %p2189_p4, %p2188_p3 }
 0x675   :  { %p2191_p6 = pnand %p2190_p5, %p2184_p2 }
 0x676   :  { %1353 = vmatpush1.bf16.msra.mxu0 %v2959_v47  ;;  %1394 = vmatpush1.bf16.msra.mxu1 %v2962_v5  ;;  %v3327_v47 = vld [vmem:[#allocation18_spill] sm:$0xff] }
 0x677   :  { %1354 = vmatprep.subr.bf16.mxu0 %v2965_v54  ;;  %1395 = vmatprep.subr.bf16.mxu1 %v2968_v0  ;;  %v3328_v5 = vsel %vm2527_vm4, %v3326_v56, %v3327_v47 }
 0x67a   :  { %1355 = vmatpush1.bf16.msra.mxu0 %v3029_v10  ;;  %1396 = vmatpush1.bf16.msra.mxu1 %v3032_v2 }
 0x67b   :  { %1356 = vmatprep.subr.bf16.mxu0 %v3035_v11  ;;  %1397 = vmatprep.subr.bf16.mxu1 %v3038_v12 }
 0x67e   :  { %1357 = vmatpush1.bf16.msra.mxu0 %v3041_v13  ;;  %1398 = vmatpush1.bf16.msra.mxu1 %v3044_v17 }
 0x67f   :  { %1358 = vmatprep.subr.bf16.mxu0 %v3047_v15  ;;  %1399 = vmatprep.subr.bf16.mxu1 %v3050_v16 }
 0x682   :  { %1359 = vmatpush1.bf16.msra.mxu0 %v3053_v32  ;;  %1400 = vmatpush1.bf16.msra.mxu1 %v3056_v46 }
 0x683   :  { %1863 = vmatprep.subr.bf16.mxu0 %v1955_v7  ;;  %1847 = vmatprep.subr.bf16.mxu1 %v1959_v63 }
 0x738   :  { %v1267_v20 = vpop.f32.mrb[40].mxu0  ;;  %v1308_v45 = vpop.f32.mrb[40].mxu1 }
 0x739   :  { %v1315_v24 = vadd.f32 %v1267_v20, %v3321_v23  ;;  %v1317_v53 = vadd.f32 %v1308_v45, %v3324_v55  ;;  %v1269_v40 = vpop.f32.mrb[41].mxu0  ;;  %v1310_v38 = vpop.f32.mrb[41].mxu1  ;;  %v3336_v20 = vld [vmem:[#allocation33_spill] sm:$0xff] }
 0x73a   :  { %v1316_v42 = vadd.f32 %v1269_v40, %v3325_v57  ;;  %v1318_v54 = vadd.f32 %v1310_v38, %v3328_v5  ;;  %v1271_v0 = vpop.f32.mrb[42].mxu0  ;;  %v1312_v52 = vpop.f32.mrb[42].mxu1 }
 0x73b   :  { %v1808_v10 = vmul.f32 -1.442695, %v1315_v24  ;;  %v1272_v2 = vpop.f32.mrb[43].mxu0  ;;  %v1313_v11 = vpop.f32.mrb[43].mxu1  ;;  %v3338_v24 = vld [vmem:[#allocation38_spill] sm:$0xff] }
 0x73c   :  { %v1809_v12 = vmul.f32 -1.442695, %v1316_v42  ;;  %v1810_v13 = vmul.f32 -1.442695, %v1318_v54  ;;  %v3340_v3 = vsel %vm2527_vm4, %v3338_v24, %v3339_v28 }
 0x73d   :  { %2071 = vpow2.f32 %v1808_v10 }
 0x73e   :  { %2073 = vpow2.f32 %v1809_v12 }
 0x73f   :  { %2075 = vpow2.f32 %v1810_v13 }
 0x740   :  { %2077 = vtanh.f32 %v1317_v53 }
 0x747   :  { %v2072_v17 = vpop.eup %2071 }
 0x748   :  { %v2074_v15 = vpop.eup %2073  ;;  %v1322_v16 = vadd.f32 1.0, %v2072_v17 }
 0x749   :  { %v1328_v62 = vadd.f32 1.0, %v2074_v15  ;;  %v2076_v49 = vpop.eup %2075 }
 0x74a   :  { %2079 = vrcp.f32 %v1322_v16  ;;  %v2078_v32 = vpop.eup %2077  ;;  %v1335_v36 = vadd.f32 1.0, %v2076_v49 }
 0x74b   :  { %2081 = vrcp.f32 %v1328_v62 }
 0x74c   :  { %2083 = vrcp.f32 %v1335_v36 }
 0x754   :  { %v2080_v46 = vpop.eup %2079 }
 0x755   :  { %v2082_v27 = vpop.eup %2081  ;;  %v1339_v58 = vmul.f32 %v2080_v46, %v2078_v32 }
 0x756   :  { %v1338_v30 = vmul.f32 %v2082_v27, %v3078_v8  ;;  %v2084_v14 = vpop.eup %2083  ;;  %v3331_v8 = vld [vmem:[#allocation40_spill] sm:$0xff]  ;;  %v1962_v27 = vld [vmem:[#allocation5 + $0x38] sm:$0xff]  }
 0x758   :  { %v3139_v25 = vadd.f32 %v1339_v58, %v1338_v30 }
 0x75a   :  { %2085 = vtanh.f32 %v3139_v25 }
 0x764   :  { %v2086_v31 = vpop.eup %2085 }
 0x765   :  { %v3142_v21 = vmul.f32 %v2086_v31, %v2084_v14 }
 0x767   :  { %v1343_v26 = vpack.c.bf16 %v3142_v21, %v3142_v21 }
 0x769   :  { %1377 = vmatmul.mubr.bf16.vlgmr.msra.gmra.mrb[44].mxu0 %v1343_v26  ;;  %1418 = vmatmul.mubr.bf16.vlgmr.msra.gmra.mrb[44].mxu1 %v1343_v26 }
 0x76a   :  { %1864 = vmatpush3.bf16.msra.mxu0 %v1955_v7  ;;  %1871 = vmatprep.mubr.msk.bf16.mxu0 %vm1522_vm5, %v3329_v51  ;;  %v3335_v7 = vld [vmem:[#allocation37_spill] sm:$0xff] }
 0x76b   :  { %1865 = vmatprep.subr.bf16.mxu0 %v1956_v44  ;;  %1848 = vmatpush3.bf16.msra.mxu1 %v1959_v63  ;;  %v3337_v45 = vsel %vm2523_vm3, %v3335_v7, %v3336_v20 }
 0x76c   :  { %1849 = vmatprep.subr.bf16.mxu1 %v1960_v43 }
 0x76e   :  { %1866 = vmatpush3.bf16.msra.mxu0 %v1956_v44 }
 0x76f   :  { %1867 = vmatprep.subr.bf16.mxu0 %v1957_v1  ;;  %1850 = vmatpush3.bf16.msra.mxu1 %v1960_v43 }
 0x770   :  { %1851 = vmatprep.subr.bf16.mxu1 %v1961_v35 }
 0x772   :  { %1868 = vmatpush3.bf16.msra.mxu0 %v1957_v1 }
 0x773   :  { %1869 = vmatprep.subr.bf16.mxu0 %v1958_v37  ;;  %1852 = vmatpush3.bf16.msra.mxu1 %v1961_v35 }
 0x774   :  { %1853 = vmatprep.subr.bf16.mxu1 %v1962_v27 }
 0x776   :  { %1870 = vmatpush3.bf16.msra.mxu0 %v1958_v37 }
 0x777   :  { %1854 = vmatpush3.bf16.msra.mxu1 %v1962_v27 }
 0x779   :  { %1872 = vmatmul.mubr.msk.bf16.vlgmr.msra.gmra.mrb[48].mxu0 %vm1522_vm5, %v3330_v33 }
 0x77a   :  { %1875 = vmatprep.mubr.msk.bf16.mxu0 %vm1522_vm5, %v1464_v19 }
 0x83c   :  { %v1378_v22 = vpop.f32.mrb[44].mxu0  ;;  %v1419_v34 = vpop.f32.mrb[44].mxu1 }
 0x83d   :  { %v1426_v29 = vadd.f32 %v1378_v22, %v3331_v8  ;;  %v1428_v61 = vadd.f32 %v1419_v34, %v3334_v39  ;;  %v1380_v60 = vpop.f32.mrb[45].mxu0  ;;  %v1421_v19 = vpop.f32.mrb[45].mxu1 }
 0x83e   :  { %v1427_v23 = vadd.f32 %v1380_v60, %v3337_v45  ;;  %v1429_v55 = vadd.f32 %v1421_v19, %v3340_v3  ;;  %v1382_v53 = vpop.f32.mrb[46].mxu0  ;;  %v1423_v41 = vpop.f32.mrb[46].mxu1 }
 0x83f   :  { %v1811_v40 = vmul.f32 -1.442695, %v1426_v29  ;;  %v1383_v38 = vpop.f32.mrb[47].mxu0  ;;  %v1424_v57 = vpop.f32.mrb[47].mxu1 }
 0x840   :  { %v1812_v42 = vmul.f32 -1.442695, %v1427_v23  ;;  %v1813_v56 = vmul.f32 -1.442695, %v1429_v55 }
 0x841   :  { %2087 = vpow2.f32 %v1811_v40 }
 0x842   :  { %2089 = vpow2.f32 %v1812_v42 }
 0x843   :  { %2091 = vpow2.f32 %v1813_v56 }
 0x844   :  { %2093 = vtanh.f32 %v1428_v61 }
 0x84b   :  { %v2088_v59 = vpop.eup %2087 }
 0x84c   :  { %v2090_v47 = vpop.eup %2089  ;;  %v1433_v5 = vadd.f32 1.0, %v2088_v59  ;;  %v1873_v54 = vpop.f32.mrb[48].mxu0 }
 0x84d   :  { %v1439_v4 = vadd.f32 1.0, %v2090_v47  ;;  %v1670_v0 = vpop.f32.mrb[49].mxu0  ;;  %v2092_v2 = vpop.eup %2091 }
 0x84e   :  { %2095 = vrcp.f32 %v1433_v5  ;;  %v1874_v52 = vpop.f32.mrb[50].mxu0  ;;  %v2094_v11 = vpop.eup %2093  ;;  %v1446_v15 = vadd.f32 1.0, %v2092_v2 }
 0x84f   :  { %2097 = vrcp.f32 %v1439_v4  ;;  %v1673_v10 = vpop.f32.mrb[51].mxu0 }
 0x850   :  { %2099 = vrcp.f32 %v1446_v15 }
 0x858   :  { %v2096_v12 = vpop.eup %2095 }
 0x859   :  { %v2098_v13 = vpop.eup %2097  ;;  %v1450_v17 = vmul.f32 %v2096_v12, %v2094_v11 }
 0x85a   :  { %v1449_v16 = vmul.f32 %v2098_v13, %v3139_v25  ;;  %v2100_v49 = vpop.eup %2099 }
 0x85c   :  { %v1451_v62 = vadd.f32 %v1450_v17, %v1449_v16 }
 0x85e   :  { %2101 = vtanh.f32 %v1451_v62 }
 0x85f   :  { %2103 = vtanh.f32 %v3142_v21  ;;  %v1495_v21 = vpop.permute.xlu1 %1494 }
 0x863   :  { %v1497_v26 = vpop.permute.xlu1 %1496 }
 0x868   :  { %v2102_v32 = vpop.eup %2101 }
 0x869   :  { %v1453_v46 = vmul.f32 %v2102_v32, %v2100_v49  ;;  %v2104_v58 = vpop.eup %2103 }
 0x86b   :  { %2105 = vtanh.f32 %v1453_v46 }
 0x875   :  { %v2106_v36 = vpop.eup %2105 }
 0x876   :  { %v1466_v30 = vpack.c.bf16 %v2104_v58, %v2106_v36  ;;  %v1465_v14 = vpack.c.bf16 %v2106_v36, %v2104_v58 }
 0x878   :  { %1490 = vrot.lane.b32.xlu0 %v1466_v30, %s2215_s2  ;;  %1876 = vmatmul.mubr.msk.bf16.gmra.mrb[52].mxu0 %vm1522_vm5, %v1465_v14 }
 0x87c   :  { %1492 = vrot.lane.b32.xlu0 %v1467_v6, %s2215_s2 }
 0x8ea   :  { %v1491_v25 = vpop.permute.xlu0 %1490 }
 0x8eb   :  { %1855 = vmatprep.mubr.msk.bf16.mxu1 %vm1522_vm5, %v1491_v25 }
 0x8ee   :  { %v1493_v31 = vpop.permute.xlu0 %1492 }
 0x8ef   :  { %1856 = vmatmul.mubr.msk.bf16.vlgmr.msra.gmra.mrb[48].mxu1 %vm1522_vm5, %v1493_v31 }
 0x8f0   :  { %1859 = vmatprep.mubr.msk.bf16.mxu1 %vm1522_vm5, %v1495_v21 }
 0x8f7   :  { %1860 = vmatmul.mubr.msk.bf16.gmra.mrb[52].mxu1 %vm1522_vm5, %v1497_v26 }
 0x94b   :  { %v1877_v44 = vpop.f32.mrb[52].mxu0 }
 0x94c   :  { %v1686_v51 = vpop.f32.mrb[53].mxu0 }
 0x94d   :  { %v1878_v1 = vpop.f32.mrb[54].mxu0 }
 0x94e   :  { %v1689_v37 = vpop.f32.mrb[55].mxu0 }
 0x9c2   :  { %v1857_v33 = vpop.f32.mrb[48].mxu1 }
 0x9c3   :  { %v1679_v18 = vadd.f32 %v1873_v54, %v1857_v33  ;;  %v1569_v6 = vpop.f32.mrb[49].mxu1 }
 0x9c4   :  { %v1671_v63 = vadd.f32 %v1670_v0, %v1569_v6  ;;  %v1858_v43 = vpop.f32.mrb[50].mxu1 }
 0x9c5   :  { %v1710_v35 = vadd.f32 %v1830_v48, %v1679_v18  ;;  %v1682_v22 = vadd.f32 %v1874_v52, %v1858_v43  ;;  %v1572_v34 = vpop.f32.mrb[51].mxu1 }
 0x9c6   :  { %v1708_v8 = vadd.f32 %v1830_v48, %v1671_v63  ;;  %v1674_v29 = vadd.f32 %v1673_v10, %v1572_v34 }
 0x9c7   :  { %1718 = vst [vmem:[#allocation7 + $0x10] sm:$0xff] %v1710_v35  ;;  %v1711_v50 = vadd.f32 %v1830_v48, %v1682_v22 }
 0x9c8   :  { %1716 = vst [vmem:[#allocation7] sm:$0xff] %v1708_v8  ;;  %v1709_v9 = vadd.f32 %v1830_v48, %v1674_v29 }
 0x9c9   :  { %1719 = vst [vmem:[#allocation7 + $0x18] sm:$0xff] %v1711_v50 }
 0x9ca   :  { %1717 = vst [vmem:[#allocation7 + $0x8] sm:$0xff] %v1709_v9  ;;  %v1861_v39 = vpop.f32.mrb[52].mxu1 }
 0x9cb   :  { %v1695_v61 = vadd.f32 %v1877_v44, %v1861_v39  ;;  %v1585_v60 = vpop.f32.mrb[53].mxu1 }
 0x9cc   :  { %v1687_v19 = vadd.f32 %v1686_v51, %v1585_v60  ;;  %v1862_v7 = vpop.f32.mrb[54].mxu1 }
 0x9cd   :  { %v1714_v20 = vadd.f32 %v1830_v48, %v1695_v61  ;;  %v1698_v45 = vadd.f32 %v1878_v1, %v1862_v7  ;;  %v1588_v23 = vpop.f32.mrb[55].mxu1 }
 0x9ce   :  { %v1712_v24 = vadd.f32 %v1830_v48, %v1687_v19  ;;  %v1690_v28 = vadd.f32 %v1689_v37, %v1588_v23 }
 0x9cf   :  { %1722 = vst [vmem:[#allocation7 + $0x30] sm:$0xff] %v1714_v20  ;;  %v1715_v3 = vadd.f32 %v1830_v48, %v1698_v45 }
 0x9d0   :  { %1720 = vst [vmem:[#allocation7 + $0x20] sm:$0xff] %v1712_v24  ;;  %v1713_v55 = vadd.f32 %v1830_v48, %v1690_v28 }
 0x9d1   :  { %1723 = vst [vmem:[#allocation7 + $0x38] sm:$0xff] %v1715_v3 }
 0x9d2   :  { %1721 = vst [vmem:[#allocation7 + $0x28] sm:$0xff] %v1713_v55 }
 0x9d3   :  { %2194 = shalt.err (!%p2191_p6)
}
 0x9d4   :  { %s2195_s20 = scalar_lea.hbm %s3207_s6, 1024 }
 0x9d5   :  { %p2196_p7 = scmp.ne.s32.totalorder %s3207_s6, %s2195_s20  ;;  %p2199_p8 = scmp.lt.u32.totalorder %s2195_s20, %s3207_s6 }
 0x9d7   :  { %p2201_p9 = pnand %p2199_p8, %p2196_p7 }
 0x9d9   :  { %2204 = shalt.err (!%p2201_p9)
}
 0x9da   :  { %s2219_s24 = smov 128   ;;  %s2220_s25 = smov 8  }
 0x9db   :  { %1735 = dma.vmem_to_hbm [thread:$0]  %s1730_s16, 1024, %s3207_s6, [#allocation4], %s2219_s24, %s2219_s24, %s2220_s25  }
 0x9dc   :  { %2209 = dma.done.wait [#allocation4], 1024  }
 0x9dd   :  { %2210 = vsyncadd [#allocation4], 4294966272 }
 0x9de   :  { %1739 = vsyncpa [#allocation3], 1 }
 0x9df   :  { %1740 = vsyncpa [#allocation6], 1 }
 0x9e0   :  { %1741 = vsyncpa [#allocation4], 1 }

</bundles_post_ra>
